<compile_context>
chip_gen: v6e
topology: v6e:2x2x1
jax: 0.10.0
libtpu: 0.0.40
codegen_flags: <defaults>
</compile_context>

<pallas_src>
import math
from functools import partial

import jax
import jax.numpy as jnp
from jax.experimental import pallas as pl
from jax.experimental.pallas import tpu as pltpu


# ---------------------------------------------------------------------------
# Dense (masked) multi-head TransformerConv with scalar edge attributes,
# traced inline inside the kernel (used for conv1, whose edge structure is
# data-dependent):
#   out = concat_h[ softmax_j( q_i.(k_j + e_ij*w_e) / sqrt(C) ) @ (v_j + e_ij*w_e) ]
#         + lin_skip(x)
# Rows with no incoming edge aggregate to 0 (only skip survives), matching the
# PyG scatter-softmax behaviour.
# ---------------------------------------------------------------------------
def _masked_edge_attention(xin, w_pack, b_pack, mask_bool, row_has_edge,
                           edge_val, we_heads, we_row, num_heads, head_dim):
    H, C = num_heads, head_dim
    HC = H * C
    scale = 1.0 / math.sqrt(C)

    # Fused q/k/v/skip projection: one MXU matmul, lane-aligned 128-wide slices.
    proj = jnp.dot(xin, w_pack, preferred_element_type=jnp.float32) + b_pack
    q = proj[:, 0 * HC:1 * HC]
    k = proj[:, 1 * HC:2 * HC]
    v = proj[:, 2 * HC:3 * HC]
    skip = proj[:, 3 * HC:4 * HC]

    # Per-head q_i . w_e for every head at once on the MXU:
    # we_heads is (HC, H), column h holds head h's C-wide w_e slice.
    q_we = jnp.dot(q, we_heads, preferred_element_type=jnp.float32)       # (Nd, H)

    lane = jax.lax.broadcasted_iota(jnp.int32, (1, HC), 1)
    out = skip
    for h in range(H):                                    # H small & static
        mh = (lane >= h * C) & (lane < (h + 1) * C)       # head-h lane mask
        qh = jnp.where(mh, q, 0.0)

        # Scores: masked-q full-width matmul == per-head q_h . k_h
        s = jax.lax.dot_general(qh, k, (((1,), (1,)), ((), ())),
                                preferred_element_type=jnp.float32)       # (Nd, Ns)
        s = s + q_we[:, h:h + 1] * edge_val
        s = jnp.where(mask_bool, s * scale, -1e30)

        # Masked softmax over source nodes (reciprocal on the EUP).
        smax = jnp.max(s, axis=1, keepdims=True)
        p = jnp.exp(s - smax)
        denom = jnp.sum(p, axis=1, keepdims=True)
        alpha = p * pl.reciprocal(denom, approx=True)

        # Aggregate values; lanes outside head h are zero, so the result lands
        # directly in its C-lane block -- no concatenate / relayout needed.
        vh = jnp.where(mh, v, 0.0)
        agg = jnp.dot(alpha, vh, preferred_element_type=jnp.float32)      # (Nd, HC)
        ae = jnp.sum(alpha * edge_val, axis=1, keepdims=True)
        agg = agg + ae * jnp.where(mh, we_row, 0.0)
        out = out + jnp.where(row_has_edge, agg, 0.0)
    return out


# GraphNorm (single graph, PyG semantics) fused with ReLU.
def _graphnorm_relu(x, w, b, ms):
    mean = jnp.mean(x, axis=0, keepdims=True)
    centered = x - mean * ms
    var = jnp.mean(centered * centered, axis=0, keepdims=True)
    y = w * centered * jax.lax.rsqrt(var + 1e-5) + b
    return jnp.maximum(y, 0.0)


# ---------------------------------------------------------------------------
# Single fused kernel: whole BiMP forward, everything VMEM-resident.
# ---------------------------------------------------------------------------
def _bimp_kernel(num_heads, head_dim, n_source, n_target,
                 x_ref, e_ref, m_ref,
                 c1w_ref, c1b_ref, c1weh_ref, c1we_ref,
                 g1w_ref, g1b_ref, g1m_ref,
                 c2w_ref, c2b_ref,
                 g2w_ref, g2b_ref, g2m_ref,
                 tgt_ref,
                 o_ref):
    H, C = num_heads, head_dim
    HC = H * C
    n_tot = n_source + n_target
    scale = 1.0 / math.sqrt(C)

    # --- stage 1: conv1 (with scalar edge attrs) + GraphNorm + ReLU ---
    m1 = m_ref[...]
    mask1 = m1 > 0.5
    rhe1 = jnp.max(m1, axis=1, keepdims=True) > 0.5
    h = _masked_edge_attention(x_ref[...], c1w_ref[...], c1b_ref[...], mask1,
                               rhe1, e_ref[...], c1weh_ref[...], c1we_ref[...],
                               H, C)
    h = _graphnorm_relu(h, g1w_ref[...], g1b_ref[...], g1m_ref[...])

    # --- stage 2: bipartite conv (targets attend to all sources) ---
    # Structural bipartite graph: queries only for destination (target) rows,
    # keys / values only for source rows.  No masking, no -inf softmax, no
    # concatenated node matrix.
    c2w = c2w_ref[...]
    c2b = c2b_ref[...]
    proj_s = jnp.dot(h, c2w, preferred_element_type=jnp.float32) + c2b
    proj_t = jnp.dot(tgt_ref[...], c2w, preferred_element_type=jnp.float32) + c2b

    k_s = proj_s[:, 1 * HC:2 * HC]
    v_s = proj_s[:, 2 * HC:3 * HC]
    skip_s = proj_s[:, 3 * HC:4 * HC]          # source rows: no incoming edges
    q_t = proj_t[:, 0 * HC:1 * HC]
    out_t = proj_t[:, 3 * HC:4 * HC]           # lin_skip(target rows)

    lane = jax.lax.broadcasted_iota(jnp.int32, (1, HC), 1)
    for hd in range(H):
        mh = (lane >= hd * C) & (lane < (hd + 1) * C)
        qh = jnp.where(mh, q_t, 0.0)
        s = jax.lax.dot_general(qh, k_s, (((1,), (1,)), ((), ())),
                                preferred_element_type=jnp.float32) * scale  # (Nt, Ns)
        smax = jnp.max(s, axis=1, keepdims=True)
        p = jnp.exp(s - smax)
        alpha = p * pl.reciprocal(jnp.sum(p, axis=1, keepdims=True), approx=True)
        vh = jnp.where(mh, v_s, 0.0)
        out_t = out_t + jnp.dot(alpha, vh, preferred_element_type=jnp.float32)

    # GraphNorm statistics over the full bipartite node set (n_tot rows), but
    # only the target rows are normalized / ReLU'd -- the source rows are
    # sliced away in the reference model right after this norm.
    g2m = g2m_ref[...]
    inv_n = 1.0 / float(n_tot)
    mean = (jnp.sum(skip_s, axis=0, keepdims=True)
            + jnp.sum(out_t, axis=0, keepdims=True)) * inv_n
    cen_s = skip_s - mean * g2m
    cen_t = out_t - mean * g2m
    var = (jnp.sum(cen_s * cen_s, axis=0, keepdims=True)
           + jnp.sum(cen_t * cen_t, axis=0, keepdims=True)) * inv_n
    xt = g2w_ref[...] * cen_t * jax.lax.rsqrt(var + 1e-5) + g2b_ref[...]
    xt = jnp.maximum(xt, 0.0)                               # (n_target, HC)

    # --- stage 3: gram matrix + global min-max scaling ---
    g = jax.lax.dot_general(xt, xt, (((1,), (1,)), ((), ())),
                            preferred_element_type=jnp.float32)
    gmin = jnp.min(g, keepdims=True)
    gmax = jnp.max(g, keepdims=True)
    inv = pl.reciprocal(gmax - gmin + 1e-8, approx=True)
    o_ref[...] = ((g - gmin) * inv).astype(o_ref.dtype)

    # TODO(synk): refine_target / multi_dim_edge / binarize branches are
    # disabled by the default constructor args and are not implemented here.


# ---------------------------------------------------------------------------
# Wrapper: parameter packing + single pallas_call (no grid, no tiling --
# everything fits comfortably in VMEM on v5e/v6e/v7x at these sizes).
# ---------------------------------------------------------------------------
def _pack_proj(p):
    w = jnp.concatenate([p["wq"], p["wk"], p["wv"], p["ws"]], axis=1)
    b = jnp.concatenate([p["bq"], p["bk"], p["bv"], p["bs"]], axis=1)
    return w, b


def bimp_forward(x, edge_mask, edge_val, params,
                 n_source, n_target, num_heads, head_dim):
    HC = num_heads * head_dim
    c1 = params["conv1"]
    c2 = params["bipartite"]
    c1w, c1b = _pack_proj(c1)
    c2w, c2b = _pack_proj(c2)

    # (HC, H) block matrix: column h carries head h's C-wide w_e slice, so a
    # single q @ we_heads matmul yields every head's q . w_e.
    head_of_lane = jnp.arange(HC) // head_dim
    we_heads = jnp.where(head_of_lane[:, None] == jnp.arange(num_heads)[None, :],
                         c1["we"][0][:, None], 0.0).astype(jnp.float32)

    kernel = partial(_bimp_kernel, num_heads, head_dim, n_source, n_target)
    vmem = pl.BlockSpec(memory_space=pltpu.MemorySpace.VMEM)
    bn1, bn2 = params["bn1"], params["bn_bip"]
    return pl.pallas_call(
        kernel,
        out_shape=jax.ShapeDtypeStruct((n_target, n_target), jnp.float32),
        in_specs=[vmem] * 16,
        out_specs=vmem,
    )(x, edge_val, edge_mask,
      c1w, c1b, we_heads, c1["we"],
      bn1["weight"], bn1["bias"], bn1["mean_scale"],
      c2w, c2b,
      bn2["weight"], bn2["bias"], bn2["mean_scale"],
      params["target_node_embeddings"])


# ---------------------------------------------------------------------------
# Deterministic parameter init (PyTorch-Linear-style uniform; synthetic)
# ---------------------------------------------------------------------------
def _linear(key, fin, fout):
    kw, kb = jax.random.split(key)
    bound = 1.0 / math.sqrt(fin)
    w = jax.random.uniform(kw, (fin, fout), jnp.float32, -bound, bound)
    b = jax.random.uniform(kb, (1, fout), jnp.float32, -bound, bound)
    return w, b


def init_params(key, n_source, n_target, hidden_dim, num_heads):
    hc = hidden_dim * num_heads
    ks = jax.random.split(key, 11)

    def conv_params(k0, k1, k2, k3, k4, fin, edge_dim):
        wq, bq = _linear(k0, fin, hc)
        wk, bk = _linear(k1, fin, hc)
        wv, bv = _linear(k2, fin, hc)
        ws, bs = _linear(k3, fin, hc)          # lin_skip (root weight), bias=True
        p = dict(wq=wq, bq=bq, wk=wk, bk=bk, wv=wv, bv=bv, ws=ws, bs=bs)
        if edge_dim is not None:               # lin_edge: Linear(edge_dim, hc, bias=False)
            we, _ = _linear(k4, edge_dim, hc)
            p["we"] = we
        return p

    def gn_params():
        return dict(weight=jnp.ones((1, hc), jnp.float32),
                    bias=jnp.zeros((1, hc), jnp.float32),
                    mean_scale=jnp.ones((1, hc), jnp.float32))

    return {
        "conv1": conv_params(ks[0], ks[1], ks[2], ks[3], ks[4],
                             fin=n_source, edge_dim=1),
        "bn1": gn_params(),
        "bipartite": conv_params(ks[5], ks[6], ks[7], ks[8], ks[9],
                                 fin=hc, edge_dim=None),
        "bn_bip": gn_params(),
        "target_node_embeddings":
            jax.random.normal(ks[10], (n_target, hc), jnp.float32),
    }


if __name__ == "__main__":
    n_source, n_target = 16, 8
    hidden_dim, num_heads = 32, 4            # head dim C = 32, H*C = 128

    key = jax.random.PRNGKey(0)
    k_x, k_adj, k_attr, k_p = jax.random.split(key, 4)

    # data.x: node features, in_channels == n_source_nodes in the module ctor
    x = jax.random.normal(k_x, (n_source, n_source), jnp.float32)

    # data.pos_edge_index as a dense adjacency mask (mask[i, j] = edge j -> i),
    # with self-loops so every node has at least one incoming edge.
    adj = (jax.random.uniform(k_adj, (n_source, n_source)) < 0.4)
    adj = adj | jnp.eye(n_source, dtype=bool)
    edge_mask = adj.astype(jnp.float32)

    # data.edge_attr (edge_dim=1) as a dense matrix aligned with the mask.
    edge_val = jax.random.normal(k_attr, (n_source, n_source), jnp.float32) * edge_mask

    params = init_params(k_p, n_source, n_target, hidden_dim, num_heads)

    out = bimp_forward(x, edge_mask, edge_val, params,
                       n_source, n_target, num_heads, hidden_dim)
    out = jax.block_until_ready(out)

    assert out.shape == (n_target, n_target)
    assert bool(jnp.all(jnp.isfinite(out)))
    print("KERNEL_OK")
</pallas_src>

<mosaic_0001>
module attributes {stable_mosaic.version = 11 : i64} {
  func.func @_bimp_kernel(%arg0: memref<16x16xf32, #tpu.memory_space<vmem>>, %arg1: memref<16x16xf32, #tpu.memory_space<vmem>>, %arg2: memref<16x16xf32, #tpu.memory_space<vmem>>, %arg3: memref<16x512xf32, #tpu.memory_space<vmem>>, %arg4: memref<1x512xf32, #tpu.memory_space<vmem>>, %arg5: memref<128x4xf32, #tpu.memory_space<vmem>>, %arg6: memref<1x128xf32, #tpu.memory_space<vmem>>, %arg7: memref<1x128xf32, #tpu.memory_space<vmem>>, %arg8: memref<1x128xf32, #tpu.memory_space<vmem>>, %arg9: memref<1x128xf32, #tpu.memory_space<vmem>>, %arg10: memref<128x512xf32, #tpu.memory_space<vmem>>, %arg11: memref<1x512xf32, #tpu.memory_space<vmem>>, %arg12: memref<1x128xf32, #tpu.memory_space<vmem>>, %arg13: memref<1x128xf32, #tpu.memory_space<vmem>>, %arg14: memref<1x128xf32, #tpu.memory_space<vmem>>, %arg15: memref<8x128xf32, #tpu.memory_space<vmem>>, %arg16: memref<8x8xf32, #tpu.memory_space<vmem>>) attributes {dimension_semantics = [], scalar_prefetch = 0 : i64, scratch_operands = 0 : i64, tpu.core_type = #tpu.core_type<tc>} {
    %c0 = arith.constant 0 : index
    %c0_0 = arith.constant 0 : index
    %0 = vector.load %arg2[%c0, %c0_0] : memref<16x16xf32, #tpu.memory_space<vmem>>, vector<16x16xf32>
    %cst = arith.constant 5.000000e-01 : f32
    %1 = vector.broadcast %cst : f32 to vector<16x16xf32>
    %2 = arith.cmpf ogt, %0, %1 : vector<16x16xf32>
    %cst_1 = arith.constant dense<0xFF800000> : vector<16xf32>
    %3 = vector.multi_reduction <maximumf>, %0, %cst_1 [1] : vector<16x16xf32> to vector<16xf32>
    %4 = vector.shape_cast %3 : vector<16xf32> to vector<16x1xf32>
    %cst_2 = arith.constant 5.000000e-01 : f32
    %5 = vector.broadcast %cst_2 : f32 to vector<16x1xf32>
    %6 = arith.cmpf ogt, %4, %5 : vector<16x1xf32>
    %c0_3 = arith.constant 0 : index
    %c0_4 = arith.constant 0 : index
    %7 = vector.load %arg0[%c0_3, %c0_4] : memref<16x16xf32, #tpu.memory_space<vmem>>, vector<16x16xf32>
    %c0_5 = arith.constant 0 : index
    %c0_6 = arith.constant 0 : index
    %8 = vector.load %arg3[%c0_5, %c0_6] : memref<16x512xf32, #tpu.memory_space<vmem>>, vector<16x512xf32>
    %c0_7 = arith.constant 0 : index
    %c0_8 = arith.constant 0 : index
    %9 = vector.load %arg4[%c0_7, %c0_8] : memref<1x512xf32, #tpu.memory_space<vmem>>, vector<1x512xf32>
    %c0_9 = arith.constant 0 : index
    %c0_10 = arith.constant 0 : index
    %10 = vector.load %arg1[%c0_9, %c0_10] : memref<16x16xf32, #tpu.memory_space<vmem>>, vector<16x16xf32>
    %c0_11 = arith.constant 0 : index
    %c0_12 = arith.constant 0 : index
    %11 = vector.load %arg5[%c0_11, %c0_12] : memref<128x4xf32, #tpu.memory_space<vmem>>, vector<128x4xf32>
    %c0_13 = arith.constant 0 : index
    %c0_14 = arith.constant 0 : index
    %12 = vector.load %arg6[%c0_13, %c0_14] : memref<1x128xf32, #tpu.memory_space<vmem>>, vector<1x128xf32>
    %cst_15 = arith.constant dense<0.000000e+00> : vector<16x512xf32>
    %13 = tpu.matmul %7, %8, %cst_15 {dimension_numbers = #tpu.dot_dimension_numbers<[1], [0], [0], [1], [0, 0, 1, 1], [], []>} : vector<16x16xf32>, vector<16x512xf32>, vector<16x512xf32> -> vector<16x512xf32>
    %14 = vector.broadcast %9 : vector<1x512xf32> to vector<16x512xf32>
    %15 = arith.addf %13, %14 : vector<16x512xf32>
    %16 = vector.extract_strided_slice %15 {offsets = [0, 0], sizes = [16, 128], strides = [1, 1]} : vector<16x512xf32> to vector<16x128xf32>
    %17 = vector.extract_strided_slice %15 {offsets = [0, 128], sizes = [16, 128], strides = [1, 1]} : vector<16x512xf32> to vector<16x128xf32>
    %18 = vector.extract_strided_slice %15 {offsets = [0, 256], sizes = [16, 128], strides = [1, 1]} : vector<16x512xf32> to vector<16x128xf32>
    %19 = vector.extract_strided_slice %15 {offsets = [0, 384], sizes = [16, 128], strides = [1, 1]} : vector<16x512xf32> to vector<16x128xf32>
    %cst_16 = arith.constant dense<0.000000e+00> : vector<16x4xf32>
    %20 = tpu.matmul %16, %11, %cst_16 {dimension_numbers = #tpu.dot_dimension_numbers<[1], [0], [0], [1], [0, 0, 1, 1], [], []>} : vector<16x128xf32>, vector<128x4xf32>, vector<16x4xf32> -> vector<16x4xf32>
    %21 = tpu.iota {dimensions = array<i32: 1>} : vector<1x128xi32>
    %c0_i32 = arith.constant 0 : i32
    %22 = vector.broadcast %c0_i32 : i32 to vector<1x128xi32>
    %23 = arith.cmpi sge, %21, %22 : vector<1x128xi32>
    %c32_i32 = arith.constant 32 : i32
    %24 = vector.broadcast %c32_i32 : i32 to vector<1x128xi32>
    %25 = arith.cmpi slt, %21, %24 : vector<1x128xi32>
    %26 = arith.andi %23, %25 : vector<1x128xi1>
    %cst_17 = arith.constant 0.000000e+00 : f32
    %27 = vector.shape_cast %26 : vector<1x128xi1> to vector<1x128xi1>
    %28 = vector.broadcast %27 : vector<1x128xi1> to vector<16x128xi1>
    %29 = vector.broadcast %cst_17 : f32 to vector<16x128xf32>
    %30 = arith.select %28, %16, %29 : vector<16x128xi1>, vector<16x128xf32>
    %cst_18 = arith.constant dense<0.000000e+00> : vector<16x16xf32>
    %31 = tpu.matmul %30, %17, %cst_18 {dimension_numbers = #tpu.dot_dimension_numbers<[1], [1], [0], [0], [0, 0, 1, 0], [], []>} : vector<16x128xf32>, vector<16x128xf32>, vector<16x16xf32> -> vector<16x16xf32>
    %32 = vector.extract_strided_slice %20 {offsets = [0, 0], sizes = [16, 1], strides = [1, 1]} : vector<16x4xf32> to vector<16x1xf32>
    %33 = vector.broadcast %32 : vector<16x1xf32> to vector<16x16xf32>
    %34 = arith.mulf %33, %10 : vector<16x16xf32>
    %35 = arith.addf %31, %34 : vector<16x16xf32>
    %cst_19 = arith.constant 0.176776692 : f32
    %36 = vector.broadcast %cst_19 : f32 to vector<16x16xf32>
    %37 = arith.mulf %35, %36 : vector<16x16xf32>
    %cst_20 = arith.constant -1.000000e+30 : f32
    %38 = vector.broadcast %cst_20 : f32 to vector<16x16xf32>
    %39 = arith.select %2, %37, %38 : vector<16x16xi1>, vector<16x16xf32>
    %cst_21 = arith.constant dense<0xFF800000> : vector<16xf32>
    %40 = vector.multi_reduction <maximumf>, %39, %cst_21 [1] : vector<16x16xf32> to vector<16xf32>
    %41 = vector.shape_cast %40 : vector<16xf32> to vector<16x1xf32>
    %42 = vector.broadcast %41 : vector<16x1xf32> to vector<16x16xf32>
    %43 = arith.subf %39, %42 : vector<16x16xf32>
    %44 = math.exp %43 : vector<16x16xf32>
    %cst_22 = arith.constant dense<0.000000e+00> : vector<16xf32>
    %45 = vector.multi_reduction <add>, %44, %cst_22 [1] : vector<16x16xf32> to vector<16xf32>
    %46 = vector.shape_cast %45 : vector<16xf32> to vector<16x1xf32>
    %47 = tpu.reciprocal %46 {approx = true} : vector<16x1xf32> -> vector<16x1xf32>
    %48 = vector.broadcast %47 : vector<16x1xf32> to vector<16x16xf32>
    %49 = arith.mulf %44, %48 : vector<16x16xf32>
    %cst_23 = arith.constant 0.000000e+00 : f32
    %50 = vector.shape_cast %26 : vector<1x128xi1> to vector<1x128xi1>
    %51 = vector.broadcast %50 : vector<1x128xi1> to vector<16x128xi1>
    %52 = vector.broadcast %cst_23 : f32 to vector<16x128xf32>
    %53 = arith.select %51, %18, %52 : vector<16x128xi1>, vector<16x128xf32>
    %cst_24 = arith.constant dense<0.000000e+00> : vector<16x128xf32>
    %54 = tpu.matmul %49, %53, %cst_24 {dimension_numbers = #tpu.dot_dimension_numbers<[1], [0], [0], [1], [0, 0, 1, 1], [], []>} : vector<16x16xf32>, vector<16x128xf32>, vector<16x128xf32> -> vector<16x128xf32>
    %55 = arith.mulf %49, %10 : vector<16x16xf32>
    %cst_25 = arith.constant dense<0.000000e+00> : vector<16xf32>
    %56 = vector.multi_reduction <add>, %55, %cst_25 [1] : vector<16x16xf32> to vector<16xf32>
    %57 = vector.shape_cast %56 : vector<16xf32> to vector<16x1xf32>
    %cst_26 = arith.constant 0.000000e+00 : f32
    %58 = vector.broadcast %cst_26 : f32 to vector<1x128xf32>
    %59 = arith.select %26, %12, %58 : vector<1x128xi1>, vector<1x128xf32>
    %60 = vector.broadcast %57 : vector<16x1xf32> to vector<16x128xf32>
    %61 = vector.broadcast %59 : vector<1x128xf32> to vector<16x128xf32>
    %62 = arith.mulf %60, %61 : vector<16x128xf32>
    %63 = arith.addf %54, %62 : vector<16x128xf32>
    %cst_27 = arith.constant 0.000000e+00 : f32
    %64 = vector.shape_cast %6 : vector<16x1xi1> to vector<16x1xi1>
    %65 = vector.broadcast %64 : vector<16x1xi1> to vector<16x128xi1>
    %66 = vector.broadcast %cst_27 : f32 to vector<16x128xf32>
    %67 = arith.select %65, %63, %66 : vector<16x128xi1>, vector<16x128xf32>
    %68 = arith.addf %19, %67 : vector<16x128xf32>
    %c32_i32_28 = arith.constant 32 : i32
    %69 = vector.broadcast %c32_i32_28 : i32 to vector<1x128xi32>
    %70 = arith.cmpi sge, %21, %69 : vector<1x128xi32>
    %c64_i32 = arith.constant 64 : i32
    %71 = vector.broadcast %c64_i32 : i32 to vector<1x128xi32>
    %72 = arith.cmpi slt, %21, %71 : vector<1x128xi32>
    %73 = arith.andi %70, %72 : vector<1x128xi1>
    %cst_29 = arith.constant 0.000000e+00 : f32
    %74 = vector.shape_cast %73 : vector<1x128xi1> to vector<1x128xi1>
    %75 = vector.broadcast %74 : vector<1x128xi1> to vector<16x128xi1>
    %76 = vector.broadcast %cst_29 : f32 to vector<16x128xf32>
    %77 = arith.select %75, %16, %76 : vector<16x128xi1>, vector<16x128xf32>
    %cst_30 = arith.constant dense<0.000000e+00> : vector<16x16xf32>
    %78 = tpu.matmul %77, %17, %cst_30 {dimension_numbers = #tpu.dot_dimension_numbers<[1], [1], [0], [0], [0, 0, 1, 0], [], []>} : vector<16x128xf32>, vector<16x128xf32>, vector<16x16xf32> -> vector<16x16xf32>
    %79 = vector.extract_strided_slice %20 {offsets = [0, 1], sizes = [16, 1], strides = [1, 1]} : vector<16x4xf32> to vector<16x1xf32>
    %80 = vector.broadcast %79 : vector<16x1xf32> to vector<16x16xf32>
    %81 = arith.mulf %80, %10 : vector<16x16xf32>
    %82 = arith.addf %78, %81 : vector<16x16xf32>
    %cst_31 = arith.constant 0.176776692 : f32
    %83 = vector.broadcast %cst_31 : f32 to vector<16x16xf32>
    %84 = arith.mulf %82, %83 : vector<16x16xf32>
    %cst_32 = arith.constant -1.000000e+30 : f32
    %85 = vector.broadcast %cst_32 : f32 to vector<16x16xf32>
    %86 = arith.select %2, %84, %85 : vector<16x16xi1>, vector<16x16xf32>
    %cst_33 = arith.constant dense<0xFF800000> : vector<16xf32>
    %87 = vector.multi_reduction <maximumf>, %86, %cst_33 [1] : vector<16x16xf32> to vector<16xf32>
    %88 = vector.shape_cast %87 : vector<16xf32> to vector<16x1xf32>
    %89 = vector.broadcast %88 : vector<16x1xf32> to vector<16x16xf32>
    %90 = arith.subf %86, %89 : vector<16x16xf32>
    %91 = math.exp %90 : vector<16x16xf32>
    %cst_34 = arith.constant dense<0.000000e+00> : vector<16xf32>
    %92 = vector.multi_reduction <add>, %91, %cst_34 [1] : vector<16x16xf32> to vector<16xf32>
    %93 = vector.shape_cast %92 : vector<16xf32> to vector<16x1xf32>
    %94 = tpu.reciprocal %93 {approx = true} : vector<16x1xf32> -> vector<16x1xf32>
    %95 = vector.broadcast %94 : vector<16x1xf32> to vector<16x16xf32>
    %96 = arith.mulf %91, %95 : vector<16x16xf32>
    %cst_35 = arith.constant 0.000000e+00 : f32
    %97 = vector.shape_cast %73 : vector<1x128xi1> to vector<1x128xi1>
    %98 = vector.broadcast %97 : vector<1x128xi1> to vector<16x128xi1>
    %99 = vector.broadcast %cst_35 : f32 to vector<16x128xf32>
    %100 = arith.select %98, %18, %99 : vector<16x128xi1>, vector<16x128xf32>
    %cst_36 = arith.constant dense<0.000000e+00> : vector<16x128xf32>
    %101 = tpu.matmul %96, %100, %cst_36 {dimension_numbers = #tpu.dot_dimension_numbers<[1], [0], [0], [1], [0, 0, 1, 1], [], []>} : vector<16x16xf32>, vector<16x128xf32>, vector<16x128xf32> -> vector<16x128xf32>
    %102 = arith.mulf %96, %10 : vector<16x16xf32>
    %cst_37 = arith.constant dense<0.000000e+00> : vector<16xf32>
    %103 = vector.multi_reduction <add>, %102, %cst_37 [1] : vector<16x16xf32> to vector<16xf32>
    %104 = vector.shape_cast %103 : vector<16xf32> to vector<16x1xf32>
    %cst_38 = arith.constant 0.000000e+00 : f32
    %105 = vector.broadcast %cst_38 : f32 to vector<1x128xf32>
    %106 = arith.select %73, %12, %105 : vector<1x128xi1>, vector<1x128xf32>
    %107 = vector.broadcast %104 : vector<16x1xf32> to vector<16x128xf32>
    %108 = vector.broadcast %106 : vector<1x128xf32> to vector<16x128xf32>
    %109 = arith.mulf %107, %108 : vector<16x128xf32>
    %110 = arith.addf %101, %109 : vector<16x128xf32>
    %cst_39 = arith.constant 0.000000e+00 : f32
    %111 = vector.shape_cast %6 : vector<16x1xi1> to vector<16x1xi1>
    %112 = vector.broadcast %111 : vector<16x1xi1> to vector<16x128xi1>
    %113 = vector.broadcast %cst_39 : f32 to vector<16x128xf32>
    %114 = arith.select %112, %110, %113 : vector<16x128xi1>, vector<16x128xf32>
    %115 = arith.addf %68, %114 : vector<16x128xf32>
    %c64_i32_40 = arith.constant 64 : i32
    %116 = vector.broadcast %c64_i32_40 : i32 to vector<1x128xi32>
    %117 = arith.cmpi sge, %21, %116 : vector<1x128xi32>
    %c96_i32 = arith.constant 96 : i32
    %118 = vector.broadcast %c96_i32 : i32 to vector<1x128xi32>
    %119 = arith.cmpi slt, %21, %118 : vector<1x128xi32>
    %120 = arith.andi %117, %119 : vector<1x128xi1>
    %cst_41 = arith.constant 0.000000e+00 : f32
    %121 = vector.shape_cast %120 : vector<1x128xi1> to vector<1x128xi1>
    %122 = vector.broadcast %121 : vector<1x128xi1> to vector<16x128xi1>
    %123 = vector.broadcast %cst_41 : f32 to vector<16x128xf32>
    %124 = arith.select %122, %16, %123 : vector<16x128xi1>, vector<16x128xf32>
    %cst_42 = arith.constant dense<0.000000e+00> : vector<16x16xf32>
    %125 = tpu.matmul %124, %17, %cst_42 {dimension_numbers = #tpu.dot_dimension_numbers<[1], [1], [0], [0], [0, 0, 1, 0], [], []>} : vector<16x128xf32>, vector<16x128xf32>, vector<16x16xf32> -> vector<16x16xf32>
    %126 = vector.extract_strided_slice %20 {offsets = [0, 2], sizes = [16, 1], strides = [1, 1]} : vector<16x4xf32> to vector<16x1xf32>
    %127 = vector.broadcast %126 : vector<16x1xf32> to vector<16x16xf32>
    %128 = arith.mulf %127, %10 : vector<16x16xf32>
    %129 = arith.addf %125, %128 : vector<16x16xf32>
    %cst_43 = arith.constant 0.176776692 : f32
    %130 = vector.broadcast %cst_43 : f32 to vector<16x16xf32>
    %131 = arith.mulf %129, %130 : vector<16x16xf32>
    %cst_44 = arith.constant -1.000000e+30 : f32
    %132 = vector.broadcast %cst_44 : f32 to vector<16x16xf32>
    %133 = arith.select %2, %131, %132 : vector<16x16xi1>, vector<16x16xf32>
    %cst_45 = arith.constant dense<0xFF800000> : vector<16xf32>
    %134 = vector.multi_reduction <maximumf>, %133, %cst_45 [1] : vector<16x16xf32> to vector<16xf32>
    %135 = vector.shape_cast %134 : vector<16xf32> to vector<16x1xf32>
    %136 = vector.broadcast %135 : vector<16x1xf32> to vector<16x16xf32>
    %137 = arith.subf %133, %136 : vector<16x16xf32>
    %138 = math.exp %137 : vector<16x16xf32>
    %cst_46 = arith.constant dense<0.000000e+00> : vector<16xf32>
    %139 = vector.multi_reduction <add>, %138, %cst_46 [1] : vector<16x16xf32> to vector<16xf32>
    %140 = vector.shape_cast %139 : vector<16xf32> to vector<16x1xf32>
    %141 = tpu.reciprocal %140 {approx = true} : vector<16x1xf32> -> vector<16x1xf32>
    %142 = vector.broadcast %141 : vector<16x1xf32> to vector<16x16xf32>
    %143 = arith.mulf %138, %142 : vector<16x16xf32>
    %cst_47 = arith.constant 0.000000e+00 : f32
    %144 = vector.shape_cast %120 : vector<1x128xi1> to vector<1x128xi1>
    %145 = vector.broadcast %144 : vector<1x128xi1> to vector<16x128xi1>
    %146 = vector.broadcast %cst_47 : f32 to vector<16x128xf32>
    %147 = arith.select %145, %18, %146 : vector<16x128xi1>, vector<16x128xf32>
    %cst_48 = arith.constant dense<0.000000e+00> : vector<16x128xf32>
    %148 = tpu.matmul %143, %147, %cst_48 {dimension_numbers = #tpu.dot_dimension_numbers<[1], [0], [0], [1], [0, 0, 1, 1], [], []>} : vector<16x16xf32>, vector<16x128xf32>, vector<16x128xf32> -> vector<16x128xf32>
    %149 = arith.mulf %143, %10 : vector<16x16xf32>
    %cst_49 = arith.constant dense<0.000000e+00> : vector<16xf32>
    %150 = vector.multi_reduction <add>, %149, %cst_49 [1] : vector<16x16xf32> to vector<16xf32>
    %151 = vector.shape_cast %150 : vector<16xf32> to vector<16x1xf32>
    %cst_50 = arith.constant 0.000000e+00 : f32
    %152 = vector.broadcast %cst_50 : f32 to vector<1x128xf32>
    %153 = arith.select %120, %12, %152 : vector<1x128xi1>, vector<1x128xf32>
    %154 = vector.broadcast %151 : vector<16x1xf32> to vector<16x128xf32>
    %155 = vector.broadcast %153 : vector<1x128xf32> to vector<16x128xf32>
    %156 = arith.mulf %154, %155 : vector<16x128xf32>
    %157 = arith.addf %148, %156 : vector<16x128xf32>
    %cst_51 = arith.constant 0.000000e+00 : f32
    %158 = vector.shape_cast %6 : vector<16x1xi1> to vector<16x1xi1>
    %159 = vector.broadcast %158 : vector<16x1xi1> to vector<16x128xi1>
    %160 = vector.broadcast %cst_51 : f32 to vector<16x128xf32>
    %161 = arith.select %159, %157, %160 : vector<16x128xi1>, vector<16x128xf32>
    %162 = arith.addf %115, %161 : vector<16x128xf32>
    %c96_i32_52 = arith.constant 96 : i32
    %163 = vector.broadcast %c96_i32_52 : i32 to vector<1x128xi32>
    %164 = arith.cmpi sge, %21, %163 : vector<1x128xi32>
    %c128_i32 = arith.constant 128 : i32
    %165 = vector.broadcast %c128_i32 : i32 to vector<1x128xi32>
    %166 = arith.cmpi slt, %21, %165 : vector<1x128xi32>
    %167 = arith.andi %164, %166 : vector<1x128xi1>
    %cst_53 = arith.constant 0.000000e+00 : f32
    %168 = vector.shape_cast %167 : vector<1x128xi1> to vector<1x128xi1>
    %169 = vector.broadcast %168 : vector<1x128xi1> to vector<16x128xi1>
    %170 = vector.broadcast %cst_53 : f32 to vector<16x128xf32>
    %171 = arith.select %169, %16, %170 : vector<16x128xi1>, vector<16x128xf32>
    %cst_54 = arith.constant dense<0.000000e+00> : vector<16x16xf32>
    %172 = tpu.matmul %171, %17, %cst_54 {dimension_numbers = #tpu.dot_dimension_numbers<[1], [1], [0], [0], [0, 0, 1, 0], [], []>} : vector<16x128xf32>, vector<16x128xf32>, vector<16x16xf32> -> vector<16x16xf32>
    %173 = vector.extract_strided_slice %20 {offsets = [0, 3], sizes = [16, 1], strides = [1, 1]} : vector<16x4xf32> to vector<16x1xf32>
    %174 = vector.broadcast %173 : vector<16x1xf32> to vector<16x16xf32>
    %175 = arith.mulf %174, %10 : vector<16x16xf32>
    %176 = arith.addf %172, %175 : vector<16x16xf32>
    %cst_55 = arith.constant 0.176776692 : f32
    %177 = vector.broadcast %cst_55 : f32 to vector<16x16xf32>
    %178 = arith.mulf %176, %177 : vector<16x16xf32>
    %cst_56 = arith.constant -1.000000e+30 : f32
    %179 = vector.broadcast %cst_56 : f32 to vector<16x16xf32>
    %180 = arith.select %2, %178, %179 : vector<16x16xi1>, vector<16x16xf32>
    %cst_57 = arith.constant dense<0xFF800000> : vector<16xf32>
    %181 = vector.multi_reduction <maximumf>, %180, %cst_57 [1] : vector<16x16xf32> to vector<16xf32>
    %182 = vector.shape_cast %181 : vector<16xf32> to vector<16x1xf32>
    %183 = vector.broadcast %182 : vector<16x1xf32> to vector<16x16xf32>
    %184 = arith.subf %180, %183 : vector<16x16xf32>
    %185 = math.exp %184 : vector<16x16xf32>
    %cst_58 = arith.constant dense<0.000000e+00> : vector<16xf32>
    %186 = vector.multi_reduction <add>, %185, %cst_58 [1] : vector<16x16xf32> to vector<16xf32>
    %187 = vector.shape_cast %186 : vector<16xf32> to vector<16x1xf32>
    %188 = tpu.reciprocal %187 {approx = true} : vector<16x1xf32> -> vector<16x1xf32>
    %189 = vector.broadcast %188 : vector<16x1xf32> to vector<16x16xf32>
    %190 = arith.mulf %185, %189 : vector<16x16xf32>
    %cst_59 = arith.constant 0.000000e+00 : f32
    %191 = vector.shape_cast %167 : vector<1x128xi1> to vector<1x128xi1>
    %192 = vector.broadcast %191 : vector<1x128xi1> to vector<16x128xi1>
    %193 = vector.broadcast %cst_59 : f32 to vector<16x128xf32>
    %194 = arith.select %192, %18, %193 : vector<16x128xi1>, vector<16x128xf32>
    %cst_60 = arith.constant dense<0.000000e+00> : vector<16x128xf32>
    %195 = tpu.matmul %190, %194, %cst_60 {dimension_numbers = #tpu.dot_dimension_numbers<[1], [0], [0], [1], [0, 0, 1, 1], [], []>} : vector<16x16xf32>, vector<16x128xf32>, vector<16x128xf32> -> vector<16x128xf32>
    %196 = arith.mulf %190, %10 : vector<16x16xf32>
    %cst_61 = arith.constant dense<0.000000e+00> : vector<16xf32>
    %197 = vector.multi_reduction <add>, %196, %cst_61 [1] : vector<16x16xf32> to vector<16xf32>
    %198 = vector.shape_cast %197 : vector<16xf32> to vector<16x1xf32>
    %cst_62 = arith.constant 0.000000e+00 : f32
    %199 = vector.broadcast %cst_62 : f32 to vector<1x128xf32>
    %200 = arith.select %167, %12, %199 : vector<1x128xi1>, vector<1x128xf32>
    %201 = vector.broadcast %198 : vector<16x1xf32> to vector<16x128xf32>
    %202 = vector.broadcast %200 : vector<1x128xf32> to vector<16x128xf32>
    %203 = arith.mulf %201, %202 : vector<16x128xf32>
    %204 = arith.addf %195, %203 : vector<16x128xf32>
    %cst_63 = arith.constant 0.000000e+00 : f32
    %205 = vector.shape_cast %6 : vector<16x1xi1> to vector<16x1xi1>
    %206 = vector.broadcast %205 : vector<16x1xi1> to vector<16x128xi1>
    %207 = vector.broadcast %cst_63 : f32 to vector<16x128xf32>
    %208 = arith.select %206, %204, %207 : vector<16x128xi1>, vector<16x128xf32>
    %209 = arith.addf %162, %208 : vector<16x128xf32>
    %c0_64 = arith.constant 0 : index
    %c0_65 = arith.constant 0 : index
    %210 = vector.load %arg7[%c0_64, %c0_65] : memref<1x128xf32, #tpu.memory_space<vmem>>, vector<1x128xf32>
    %c0_66 = arith.constant 0 : index
    %c0_67 = arith.constant 0 : index
    %211 = vector.load %arg8[%c0_66, %c0_67] : memref<1x128xf32, #tpu.memory_space<vmem>>, vector<1x128xf32>
    %c0_68 = arith.constant 0 : index
    %c0_69 = arith.constant 0 : index
    %212 = vector.load %arg9[%c0_68, %c0_69] : memref<1x128xf32, #tpu.memory_space<vmem>>, vector<1x128xf32>
    %cst_70 = arith.constant dense<0.000000e+00> : vector<128xf32>
    %213 = vector.multi_reduction <add>, %209, %cst_70 [0] : vector<16x128xf32> to vector<128xf32>
    %214 = vector.shape_cast %213 : vector<128xf32> to vector<1x128xf32>
    %cst_71 = arith.constant 1.600000e+01 : f32
    %215 = vector.broadcast %cst_71 : f32 to vector<1x128xf32>
    %216 = arith.divf %214, %215 : vector<1x128xf32>
    %217 = arith.mulf %216, %212 : vector<1x128xf32>
    %218 = vector.broadcast %217 : vector<1x128xf32> to vector<16x128xf32>
    %219 = arith.subf %209, %218 : vector<16x128xf32>
    %220 = arith.mulf %219, %219 : vector<16x128xf32>
    %cst_72 = arith.constant dense<0.000000e+00> : vector<128xf32>
    %221 = vector.multi_reduction <add>, %220, %cst_72 [0] : vector<16x128xf32> to vector<128xf32>
    %222 = vector.shape_cast %221 : vector<128xf32> to vector<1x128xf32>
    %cst_73 = arith.constant 1.600000e+01 : f32
    %223 = vector.broadcast %cst_73 : f32 to vector<1x128xf32>
    %224 = arith.divf %222, %223 : vector<1x128xf32>
    %225 = vector.broadcast %210 : vector<1x128xf32> to vector<16x128xf32>
    %226 = arith.mulf %225, %219 : vector<16x128xf32>
    %cst_74 = arith.constant 9.99999974E-6 : f32
    %227 = vector.broadcast %cst_74 : f32 to vector<1x128xf32>
    %228 = arith.addf %224, %227 : vector<1x128xf32>
    %229 = math.rsqrt %228 : vector<1x128xf32>
    %230 = vector.broadcast %229 : vector<1x128xf32> to vector<16x128xf32>
    %231 = arith.mulf %226, %230 : vector<16x128xf32>
    %232 = vector.broadcast %211 : vector<1x128xf32> to vector<16x128xf32>
    %233 = arith.addf %231, %232 : vector<16x128xf32>
    %cst_75 = arith.constant 0.000000e+00 : f32
    %234 = vector.broadcast %cst_75 : f32 to vector<16x128xf32>
    %235 = arith.maximumf %233, %234 : vector<16x128xf32>
    %c0_76 = arith.constant 0 : index
    %c0_77 = arith.constant 0 : index
    %236 = vector.load %arg10[%c0_76, %c0_77] : memref<128x512xf32, #tpu.memory_space<vmem>>, vector<128x512xf32>
    %c0_78 = arith.constant 0 : index
    %c0_79 = arith.constant 0 : index
    %237 = vector.load %arg11[%c0_78, %c0_79] : memref<1x512xf32, #tpu.memory_space<vmem>>, vector<1x512xf32>
    %cst_80 = arith.constant dense<0.000000e+00> : vector<16x512xf32>
    %238 = tpu.matmul %235, %236, %cst_80 {dimension_numbers = #tpu.dot_dimension_numbers<[1], [0], [0], [1], [0, 0, 1, 1], [], []>} : vector<16x128xf32>, vector<128x512xf32>, vector<16x512xf32> -> vector<16x512xf32>
    %239 = vector.broadcast %237 : vector<1x512xf32> to vector<16x512xf32>
    %240 = arith.addf %238, %239 : vector<16x512xf32>
    %c0_81 = arith.constant 0 : index
    %c0_82 = arith.constant 0 : index
    %241 = vector.load %arg15[%c0_81, %c0_82] : memref<8x128xf32, #tpu.memory_space<vmem>>, vector<8x128xf32>
    %cst_83 = arith.constant dense<0.000000e+00> : vector<8x512xf32>
    %242 = tpu.matmul %241, %236, %cst_83 {dimension_numbers = #tpu.dot_dimension_numbers<[1], [0], [0], [1], [0, 0, 1, 1], [], []>} : vector<8x128xf32>, vector<128x512xf32>, vector<8x512xf32> -> vector<8x512xf32>
    %243 = vector.broadcast %237 : vector<1x512xf32> to vector<8x512xf32>
    %244 = arith.addf %242, %243 : vector<8x512xf32>
    %245 = vector.extract_strided_slice %240 {offsets = [0, 128], sizes = [16, 128], strides = [1, 1]} : vector<16x512xf32> to vector<16x128xf32>
    %246 = vector.extract_strided_slice %240 {offsets = [0, 256], sizes = [16, 128], strides = [1, 1]} : vector<16x512xf32> to vector<16x128xf32>
    %247 = vector.extract_strided_slice %240 {offsets = [0, 384], sizes = [16, 128], strides = [1, 1]} : vector<16x512xf32> to vector<16x128xf32>
    %248 = vector.extract_strided_slice %244 {offsets = [0, 0], sizes = [8, 128], strides = [1, 1]} : vector<8x512xf32> to vector<8x128xf32>
    %249 = vector.extract_strided_slice %244 {offsets = [0, 384], sizes = [8, 128], strides = [1, 1]} : vector<8x512xf32> to vector<8x128xf32>
    %250 = tpu.iota {dimensions = array<i32: 1>} : vector<1x128xi32>
    %c0_i32_84 = arith.constant 0 : i32
    %251 = vector.broadcast %c0_i32_84 : i32 to vector<1x128xi32>
    %252 = arith.cmpi sge, %250, %251 : vector<1x128xi32>
    %c32_i32_85 = arith.constant 32 : i32
    %253 = vector.broadcast %c32_i32_85 : i32 to vector<1x128xi32>
    %254 = arith.cmpi slt, %250, %253 : vector<1x128xi32>
    %255 = arith.andi %252, %254 : vector<1x128xi1>
    %cst_86 = arith.constant 0.000000e+00 : f32
    %256 = vector.shape_cast %255 : vector<1x128xi1> to vector<1x128xi1>
    %257 = vector.broadcast %256 : vector<1x128xi1> to vector<8x128xi1>
    %258 = vector.broadcast %cst_86 : f32 to vector<8x128xf32>
    %259 = arith.select %257, %248, %258 : vector<8x128xi1>, vector<8x128xf32>
    %cst_87 = arith.constant dense<0.000000e+00> : vector<8x16xf32>
    %260 = tpu.matmul %259, %245, %cst_87 {dimension_numbers = #tpu.dot_dimension_numbers<[1], [1], [0], [0], [0, 0, 1, 0], [], []>} : vector<8x128xf32>, vector<16x128xf32>, vector<8x16xf32> -> vector<8x16xf32>
    %cst_88 = arith.constant 0.176776692 : f32
    %261 = vector.broadcast %cst_88 : f32 to vector<8x16xf32>
    %262 = arith.mulf %260, %261 : vector<8x16xf32>
    %cst_89 = arith.constant dense<0xFF800000> : vector<8xf32>
    %263 = vector.multi_reduction <maximumf>, %262, %cst_89 [1] : vector<8x16xf32> to vector<8xf32>
    %264 = vector.shape_cast %263 : vector<8xf32> to vector<8x1xf32>
    %265 = vector.broadcast %264 : vector<8x1xf32> to vector<8x16xf32>
    %266 = arith.subf %262, %265 : vector<8x16xf32>
    %267 = math.exp %266 : vector<8x16xf32>
    %cst_90 = arith.constant dense<0.000000e+00> : vector<8xf32>
    %268 = vector.multi_reduction <add>, %267, %cst_90 [1] : vector<8x16xf32> to vector<8xf32>
    %269 = vector.shape_cast %268 : vector<8xf32> to vector<8x1xf32>
    %270 = tpu.reciprocal %269 {approx = true} : vector<8x1xf32> -> vector<8x1xf32>
    %271 = vector.broadcast %270 : vector<8x1xf32> to vector<8x16xf32>
    %272 = arith.mulf %267, %271 : vector<8x16xf32>
    %cst_91 = arith.constant 0.000000e+00 : f32
    %273 = vector.shape_cast %255 : vector<1x128xi1> to vector<1x128xi1>
    %274 = vector.broadcast %273 : vector<1x128xi1> to vector<16x128xi1>
    %275 = vector.broadcast %cst_91 : f32 to vector<16x128xf32>
    %276 = arith.select %274, %246, %275 : vector<16x128xi1>, vector<16x128xf32>
    %cst_92 = arith.constant dense<0.000000e+00> : vector<8x128xf32>
    %277 = tpu.matmul %272, %276, %cst_92 {dimension_numbers = #tpu.dot_dimension_numbers<[1], [0], [0], [1], [0, 0, 1, 1], [], []>} : vector<8x16xf32>, vector<16x128xf32>, vector<8x128xf32> -> vector<8x128xf32>
    %278 = arith.addf %249, %277 : vector<8x128xf32>
    %c32_i32_93 = arith.constant 32 : i32
    %279 = vector.broadcast %c32_i32_93 : i32 to vector<1x128xi32>
    %280 = arith.cmpi sge, %250, %279 : vector<1x128xi32>
    %c64_i32_94 = arith.constant 64 : i32
    %281 = vector.broadcast %c64_i32_94 : i32 to vector<1x128xi32>
    %282 = arith.cmpi slt, %250, %281 : vector<1x128xi32>
    %283 = arith.andi %280, %282 : vector<1x128xi1>
    %cst_95 = arith.constant 0.000000e+00 : f32
    %284 = vector.shape_cast %283 : vector<1x128xi1> to vector<1x128xi1>
    %285 = vector.broadcast %284 : vector<1x128xi1> to vector<8x128xi1>
    %286 = vector.broadcast %cst_95 : f32 to vector<8x128xf32>
    %287 = arith.select %285, %248, %286 : vector<8x128xi1>, vector<8x128xf32>
    %cst_96 = arith.constant dense<0.000000e+00> : vector<8x16xf32>
    %288 = tpu.matmul %287, %245, %cst_96 {dimension_numbers = #tpu.dot_dimension_numbers<[1], [1], [0], [0], [0, 0, 1, 0], [], []>} : vector<8x128xf32>, vector<16x128xf32>, vector<8x16xf32> -> vector<8x16xf32>
    %cst_97 = arith.constant 0.176776692 : f32
    %289 = vector.broadcast %cst_97 : f32 to vector<8x16xf32>
    %290 = arith.mulf %288, %289 : vector<8x16xf32>
    %cst_98 = arith.constant dense<0xFF800000> : vector<8xf32>
    %291 = vector.multi_reduction <maximumf>, %290, %cst_98 [1] : vector<8x16xf32> to vector<8xf32>
    %292 = vector.shape_cast %291 : vector<8xf32> to vector<8x1xf32>
    %293 = vector.broadcast %292 : vector<8x1xf32> to vector<8x16xf32>
    %294 = arith.subf %290, %293 : vector<8x16xf32>
    %295 = math.exp %294 : vector<8x16xf32>
    %cst_99 = arith.constant dense<0.000000e+00> : vector<8xf32>
    %296 = vector.multi_reduction <add>, %295, %cst_99 [1] : vector<8x16xf32> to vector<8xf32>
    %297 = vector.shape_cast %296 : vector<8xf32> to vector<8x1xf32>
    %298 = tpu.reciprocal %297 {approx = true} : vector<8x1xf32> -> vector<8x1xf32>
    %299 = vector.broadcast %298 : vector<8x1xf32> to vector<8x16xf32>
    %300 = arith.mulf %295, %299 : vector<8x16xf32>
    %cst_100 = arith.constant 0.000000e+00 : f32
    %301 = vector.shape_cast %283 : vector<1x128xi1> to vector<1x128xi1>
    %302 = vector.broadcast %301 : vector<1x128xi1> to vector<16x128xi1>
    %303 = vector.broadcast %cst_100 : f32 to vector<16x128xf32>
    %304 = arith.select %302, %246, %303 : vector<16x128xi1>, vector<16x128xf32>
    %cst_101 = arith.constant dense<0.000000e+00> : vector<8x128xf32>
    %305 = tpu.matmul %300, %304, %cst_101 {dimension_numbers = #tpu.dot_dimension_numbers<[1], [0], [0], [1], [0, 0, 1, 1], [], []>} : vector<8x16xf32>, vector<16x128xf32>, vector<8x128xf32> -> vector<8x128xf32>
    %306 = arith.addf %278, %305 : vector<8x128xf32>
    %c64_i32_102 = arith.constant 64 : i32
    %307 = vector.broadcast %c64_i32_102 : i32 to vector<1x128xi32>
    %308 = arith.cmpi sge, %250, %307 : vector<1x128xi32>
    %c96_i32_103 = arith.constant 96 : i32
    %309 = vector.broadcast %c96_i32_103 : i32 to vector<1x128xi32>
    %310 = arith.cmpi slt, %250, %309 : vector<1x128xi32>
    %311 = arith.andi %308, %310 : vector<1x128xi1>
    %cst_104 = arith.constant 0.000000e+00 : f32
    %312 = vector.shape_cast %311 : vector<1x128xi1> to vector<1x128xi1>
    %313 = vector.broadcast %312 : vector<1x128xi1> to vector<8x128xi1>
    %314 = vector.broadcast %cst_104 : f32 to vector<8x128xf32>
    %315 = arith.select %313, %248, %314 : vector<8x128xi1>, vector<8x128xf32>
    %cst_105 = arith.constant dense<0.000000e+00> : vector<8x16xf32>
    %316 = tpu.matmul %315, %245, %cst_105 {dimension_numbers = #tpu.dot_dimension_numbers<[1], [1], [0], [0], [0, 0, 1, 0], [], []>} : vector<8x128xf32>, vector<16x128xf32>, vector<8x16xf32> -> vector<8x16xf32>
    %cst_106 = arith.constant 0.176776692 : f32
    %317 = vector.broadcast %cst_106 : f32 to vector<8x16xf32>
    %318 = arith.mulf %316, %317 : vector<8x16xf32>
    %cst_107 = arith.constant dense<0xFF800000> : vector<8xf32>
    %319 = vector.multi_reduction <maximumf>, %318, %cst_107 [1] : vector<8x16xf32> to vector<8xf32>
    %320 = vector.shape_cast %319 : vector<8xf32> to vector<8x1xf32>
    %321 = vector.broadcast %320 : vector<8x1xf32> to vector<8x16xf32>
    %322 = arith.subf %318, %321 : vector<8x16xf32>
    %323 = math.exp %322 : vector<8x16xf32>
    %cst_108 = arith.constant dense<0.000000e+00> : vector<8xf32>
    %324 = vector.multi_reduction <add>, %323, %cst_108 [1] : vector<8x16xf32> to vector<8xf32>
    %325 = vector.shape_cast %324 : vector<8xf32> to vector<8x1xf32>
    %326 = tpu.reciprocal %325 {approx = true} : vector<8x1xf32> -> vector<8x1xf32>
    %327 = vector.broadcast %326 : vector<8x1xf32> to vector<8x16xf32>
    %328 = arith.mulf %323, %327 : vector<8x16xf32>
    %cst_109 = arith.constant 0.000000e+00 : f32
    %329 = vector.shape_cast %311 : vector<1x128xi1> to vector<1x128xi1>
    %330 = vector.broadcast %329 : vector<1x128xi1> to vector<16x128xi1>
    %331 = vector.broadcast %cst_109 : f32 to vector<16x128xf32>
    %332 = arith.select %330, %246, %331 : vector<16x128xi1>, vector<16x128xf32>
    %cst_110 = arith.constant dense<0.000000e+00> : vector<8x128xf32>
    %333 = tpu.matmul %328, %332, %cst_110 {dimension_numbers = #tpu.dot_dimension_numbers<[1], [0], [0], [1], [0, 0, 1, 1], [], []>} : vector<8x16xf32>, vector<16x128xf32>, vector<8x128xf32> -> vector<8x128xf32>
    %334 = arith.addf %306, %333 : vector<8x128xf32>
    %c96_i32_111 = arith.constant 96 : i32
    %335 = vector.broadcast %c96_i32_111 : i32 to vector<1x128xi32>
    %336 = arith.cmpi sge, %250, %335 : vector<1x128xi32>
    %c128_i32_112 = arith.constant 128 : i32
    %337 = vector.broadcast %c128_i32_112 : i32 to vector<1x128xi32>
    %338 = arith.cmpi slt, %250, %337 : vector<1x128xi32>
    %339 = arith.andi %336, %338 : vector<1x128xi1>
    %cst_113 = arith.constant 0.000000e+00 : f32
    %340 = vector.shape_cast %339 : vector<1x128xi1> to vector<1x128xi1>
    %341 = vector.broadcast %340 : vector<1x128xi1> to vector<8x128xi1>
    %342 = vector.broadcast %cst_113 : f32 to vector<8x128xf32>
    %343 = arith.select %341, %248, %342 : vector<8x128xi1>, vector<8x128xf32>
    %cst_114 = arith.constant dense<0.000000e+00> : vector<8x16xf32>
    %344 = tpu.matmul %343, %245, %cst_114 {dimension_numbers = #tpu.dot_dimension_numbers<[1], [1], [0], [0], [0, 0, 1, 0], [], []>} : vector<8x128xf32>, vector<16x128xf32>, vector<8x16xf32> -> vector<8x16xf32>
    %cst_115 = arith.constant 0.176776692 : f32
    %345 = vector.broadcast %cst_115 : f32 to vector<8x16xf32>
    %346 = arith.mulf %344, %345 : vector<8x16xf32>
    %cst_116 = arith.constant dense<0xFF800000> : vector<8xf32>
    %347 = vector.multi_reduction <maximumf>, %346, %cst_116 [1] : vector<8x16xf32> to vector<8xf32>
    %348 = vector.shape_cast %347 : vector<8xf32> to vector<8x1xf32>
    %349 = vector.broadcast %348 : vector<8x1xf32> to vector<8x16xf32>
    %350 = arith.subf %346, %349 : vector<8x16xf32>
    %351 = math.exp %350 : vector<8x16xf32>
    %cst_117 = arith.constant dense<0.000000e+00> : vector<8xf32>
    %352 = vector.multi_reduction <add>, %351, %cst_117 [1] : vector<8x16xf32> to vector<8xf32>
    %353 = vector.shape_cast %352 : vector<8xf32> to vector<8x1xf32>
    %354 = tpu.reciprocal %353 {approx = true} : vector<8x1xf32> -> vector<8x1xf32>
    %355 = vector.broadcast %354 : vector<8x1xf32> to vector<8x16xf32>
    %356 = arith.mulf %351, %355 : vector<8x16xf32>
    %cst_118 = arith.constant 0.000000e+00 : f32
    %357 = vector.shape_cast %339 : vector<1x128xi1> to vector<1x128xi1>
    %358 = vector.broadcast %357 : vector<1x128xi1> to vector<16x128xi1>
    %359 = vector.broadcast %cst_118 : f32 to vector<16x128xf32>
    %360 = arith.select %358, %246, %359 : vector<16x128xi1>, vector<16x128xf32>
    %cst_119 = arith.constant dense<0.000000e+00> : vector<8x128xf32>
    %361 = tpu.matmul %356, %360, %cst_119 {dimension_numbers = #tpu.dot_dimension_numbers<[1], [0], [0], [1], [0, 0, 1, 1], [], []>} : vector<8x16xf32>, vector<16x128xf32>, vector<8x128xf32> -> vector<8x128xf32>
    %362 = arith.addf %334, %361 : vector<8x128xf32>
    %c0_120 = arith.constant 0 : index
    %c0_121 = arith.constant 0 : index
    %363 = vector.load %arg14[%c0_120, %c0_121] : memref<1x128xf32, #tpu.memory_space<vmem>>, vector<1x128xf32>
    %cst_122 = arith.constant dense<0.000000e+00> : vector<128xf32>
    %364 = vector.multi_reduction <add>, %247, %cst_122 [0] : vector<16x128xf32> to vector<128xf32>
    %365 = vector.shape_cast %364 : vector<128xf32> to vector<1x128xf32>
    %cst_123 = arith.constant dense<0.000000e+00> : vector<128xf32>
    %366 = vector.multi_reduction <add>, %362, %cst_123 [0] : vector<8x128xf32> to vector<128xf32>
    %367 = vector.shape_cast %366 : vector<128xf32> to vector<1x128xf32>
    %368 = arith.addf %365, %367 : vector<1x128xf32>
    %cst_124 = arith.constant 0.0416666679 : f32
    %369 = vector.broadcast %cst_124 : f32 to vector<1x128xf32>
    %370 = arith.mulf %368, %369 : vector<1x128xf32>
    %371 = arith.mulf %370, %363 : vector<1x128xf32>
    %372 = vector.broadcast %371 : vector<1x128xf32> to vector<16x128xf32>
    %373 = arith.subf %247, %372 : vector<16x128xf32>
    %374 = arith.mulf %370, %363 : vector<1x128xf32>
    %375 = vector.broadcast %374 : vector<1x128xf32> to vector<8x128xf32>
    %376 = arith.subf %362, %375 : vector<8x128xf32>
    %377 = arith.mulf %373, %373 : vector<16x128xf32>
    %cst_125 = arith.constant dense<0.000000e+00> : vector<128xf32>
    %378 = vector.multi_reduction <add>, %377, %cst_125 [0] : vector<16x128xf32> to vector<128xf32>
    %379 = vector.shape_cast %378 : vector<128xf32> to vector<1x128xf32>
    %380 = arith.mulf %376, %376 : vector<8x128xf32>
    %cst_126 = arith.constant dense<0.000000e+00> : vector<128xf32>
    %381 = vector.multi_reduction <add>, %380, %cst_126 [0] : vector<8x128xf32> to vector<128xf32>
    %382 = vector.shape_cast %381 : vector<128xf32> to vector<1x128xf32>
    %383 = arith.addf %379, %382 : vector<1x128xf32>
    %cst_127 = arith.constant 0.0416666679 : f32
    %384 = vector.broadcast %cst_127 : f32 to vector<1x128xf32>
    %385 = arith.mulf %383, %384 : vector<1x128xf32>
    %c0_128 = arith.constant 0 : index
    %c0_129 = arith.constant 0 : index
    %386 = vector.load %arg12[%c0_128, %c0_129] : memref<1x128xf32, #tpu.memory_space<vmem>>, vector<1x128xf32>
    %387 = vector.broadcast %386 : vector<1x128xf32> to vector<8x128xf32>
    %388 = arith.mulf %387, %376 : vector<8x128xf32>
    %cst_130 = arith.constant 9.99999974E-6 : f32
    %389 = vector.broadcast %cst_130 : f32 to vector<1x128xf32>
    %390 = arith.addf %385, %389 : vector<1x128xf32>
    %391 = math.rsqrt %390 : vector<1x128xf32>
    %392 = vector.broadcast %391 : vector<1x128xf32> to vector<8x128xf32>
    %393 = arith.mulf %388, %392 : vector<8x128xf32>
    %c0_131 = arith.constant 0 : index
    %c0_132 = arith.constant 0 : index
    %394 = vector.load %arg13[%c0_131, %c0_132] : memref<1x128xf32, #tpu.memory_space<vmem>>, vector<1x128xf32>
    %395 = vector.broadcast %394 : vector<1x128xf32> to vector<8x128xf32>
    %396 = arith.addf %393, %395 : vector<8x128xf32>
    %cst_133 = arith.constant 0.000000e+00 : f32
    %397 = vector.broadcast %cst_133 : f32 to vector<8x128xf32>
    %398 = arith.maximumf %396, %397 : vector<8x128xf32>
    %cst_134 = arith.constant dense<0.000000e+00> : vector<8x8xf32>
    %399 = tpu.matmul %398, %398, %cst_134 {dimension_numbers = #tpu.dot_dimension_numbers<[1], [1], [0], [0], [0, 0, 1, 0], [], []>} : vector<8x128xf32>, vector<8x128xf32>, vector<8x8xf32> -> vector<8x8xf32>
    %400 = vector.shape_cast %399 : vector<8x8xf32> to vector<1x8x8xf32>
    %cst_135 = arith.constant dense<0x7F800000> : vector<1xf32>
    %401 = vector.multi_reduction <minimumf>, %400, %cst_135 [1, 2] : vector<1x8x8xf32> to vector<1xf32>
    %402 = vector.shape_cast %401 : vector<1xf32> to vector<1x1x1xf32>
    %403 = vector.extract %402[0, 0, 0] : f32 from vector<1x1x1xf32>
    %404 = vector.broadcast %403 : f32 to vector<1x1xf32>
    %405 = vector.shape_cast %399 : vector<8x8xf32> to vector<1x8x8xf32>
    %cst_136 = arith.constant dense<0xFF800000> : vector<1xf32>
    %406 = vector.multi_reduction <maximumf>, %405, %cst_136 [1, 2] : vector<1x8x8xf32> to vector<1xf32>
    %407 = vector.shape_cast %406 : vector<1xf32> to vector<1x1x1xf32>
    %408 = vector.extract %407[0, 0, 0] : f32 from vector<1x1x1xf32>
    %409 = vector.broadcast %408 : f32 to vector<1x1xf32>
    %410 = arith.subf %409, %404 : vector<1x1xf32>
    %cst_137 = arith.constant 9.99999993E-9 : f32
    %411 = vector.broadcast %cst_137 : f32 to vector<1x1xf32>
    %412 = arith.addf %410, %411 : vector<1x1xf32>
    %413 = tpu.reciprocal %412 {approx = true} : vector<1x1xf32> -> vector<1x1xf32>
    %414 = vector.broadcast %404 : vector<1x1xf32> to vector<8x8xf32>
    %415 = arith.subf %399, %414 : vector<8x8xf32>
    %416 = vector.broadcast %413 : vector<1x1xf32> to vector<8x8xf32>
    %417 = arith.mulf %415, %416 : vector<8x8xf32>
    %c0_138 = arith.constant 0 : index
    %c0_139 = arith.constant 0 : index
    %418 = vector.load %arg16[%c0_138, %c0_139] : memref<8x8xf32, #tpu.memory_space<vmem>>, vector<8x8xf32>
    tpu.vector_store %arg16[%c0_138, %c0_139], %417 {strides = array<i32>} : memref<8x8xf32, #tpu.memory_space<vmem>>, vector<8x8xf32>,
    return
  }
}

</mosaic_0001>

<bundles_post_ra>
// kernel: tpu_custom_call.1
= control target key start
LH: loop header
LB: loop body
LE: loop exit
PB: predicated region body
PF: predicated region fallthrough
CT: control target
= control target key end

     0   :  { %s3795_s0 = inlined_call_operand.vmem [shape: f32[16,16], index: 0, kind: input, shape index: {}]   ;;  %s3796_s1 = inlined_call_operand.vmem [shape: f32[16,16], index: 1, kind: input, shape index: {}]   ;;  %s3797_s2 = inlined_call_operand.vmem [shape: f32[16,16], index: 2, kind: input, shape index: {}]   ;;  %s3798_s3 = inlined_call_operand.vmem [shape: f32[16,512], index: 3, kind: input, shape index: {}]   ;;  %s3799_s4 = inlined_call_operand.vmem [shape: f32[1,512], index: 4, kind: input, shape index: {}]   ;;  %s3800_s5 = inlined_call_operand.vmem [shape: f32[128,4], index: 5, kind: input, shape index: {}]   ;;  %s3801_s6 = inlined_call_operand.vmem [shape: f32[1,128], index: 6, kind: input, shape index: {}]   ;;  %s3802_s7 = inlined_call_operand.vmem [shape: f32[1,128], index: 7, kind: input, shape index: {}]   ;;  %s3803_s8 = inlined_call_operand.vmem [shape: f32[1,128], index: 8, kind: input, shape index: {}]   ;;  %s3804_s9 = inlined_call_operand.vmem [shape: f32[1,128], index: 9, kind: input, shape index: {}]   ;;  %s3805_s10 = inlined_call_operand.hbm [shape: f32[128,512], index: 10, kind: input, shape index: {}]   ;;  %s3806_s11 = inlined_call_operand.vmem [shape: f32[1,512], index: 11, kind: input, shape index: {}]   ;;  %s3807_s12 = inlined_call_operand.vmem [shape: f32[1,128], index: 12, kind: input, shape index: {}]   ;;  %s3808_s13 = inlined_call_operand.vmem [shape: f32[1,128], index: 13, kind: input, shape index: {}]   ;;  %s3809_s14 = inlined_call_operand.vmem [shape: f32[1,128], index: 14, kind: input, shape index: {}]   ;;  %s3810_s15 = inlined_call_operand.vmem [shape: f32[8,128], index: 15, kind: input, shape index: {}]   ;;  %s3811_s16 = inlined_call_operand.hbm [shape: f32[8,8], index: 16, kind: output, shape index: {}]  }
   0x1   :  { %3857 = sst [smem:[#allocation43_spill]] %s3795_s0 }
   0x2   :  { %21 = vsyncpa [#allocation3], 0 }
   0x3   :  { %22 = vsyncpa [#allocation4], 0  ;;  %s2891_s21 = smov [#allocation2]  }
   0x4   :  { %s48_s22 = sshll.u32 %s2891_s21, 4  ;;  %s49_s22 = int_to_ptr.vmem [resolvable:$true] %s48_s22 }
   0x5   :  { %s2855_s23 = scalar_lea.vmem %s49_s22, 8192  ;;  %p2860_p1 = scmp.lt.s32.totalorder %s49_s22, %s49_s22 }
   0x6   :  { %p2856_p0 = scmp.ne.s32.totalorder %s49_s22, %s2855_s23  ;;  %p2861_p2 = scmp.lt.s32.totalorder %s2855_s23, %s2855_s23 }
   0x8   :  { %p2862_p3 = por %p2861_p2, %p2860_p1 }
   0xa   :  { %p2863_p4 = pnand %p2862_p3, %p2856_p0 }
   0xc   :  { %2866 = shalt.err (!%p2863_p4)
}
   0xd   :  { %s2892_s24 = smov 512   ;;  %s2893_s25 = smov 32  }
   0xe   :  { %54 = dma.hbm_to_vmem [thread:$0]  %s3805_s10, 8192, %s49_s22, [#allocation3], %s2892_s24, %s2892_s24, %s2893_s25  }
   0xf   :  { %2887 = dma.done.wait [#allocation3], 8192  }
  0x10   :  { %2888 = vsyncadd [#allocation3], 4294959104  ;;  %v3815_v0 = vmov 0.0   ;;  %v88_v1 = vld [vmem:[%s3798_s3 + $0x28] sm:$0xff]  ;;  %v87_v2 = vld [vmem:[%s3798_s3 + $0x20] sm:$0xff]  ;;  %s3858_s22 = sld [smem:[#allocation43_spill]]  ;;  %v112_v27 = vlaneseq }
  0x11   :  { %202 = vmatprep.mubr.f32.mxu0 %v3815_v0  ;;  %279 = vmatprep.mubr.f32.mxu1 %v3815_v0  ;;  %v84_v3 = vld [vmem:[%s3798_s3 + $0x8] sm:$0xff]  ;;  %v83_v4 = vld [vmem:[%s3798_s3] sm:$0xff]  ;;  %vm72_vm0 = vcmask 130048   ;;  %v90_v6 = vld [vmem:[%s3798_s3 + $0x38] sm:$0xff]  ;;  %v2895_v50 = vmov 0   ;;  %v3861_v51 = vmov 0 }
  0x12   :  { %166 = vmatprep.subr.mxu0 %v88_v1  ;;  %v89_v7 = vld [vmem:[%s3798_s3 + $0x30] sm:$0xff]  ;;  %v86_v8 = vld [vmem:[%s3798_s3 + $0x18] sm:$0xff]  ;;  %243 = vmatprep.subr.mxu1 %v90_v6  ;;  %v107_v13 = vld [vmem:[%s3800_s5 + $0x68] sm:$0xff]  ;;  %v3075_v28 = vshrl.u32 %v112_v27, 7  ;;  %v3085_v31 = vand.u32 127, %v112_v27  ;;  %v3864_v27 = vmov 0 }
  0x13   :  { %167 = vmatpush1.msra.mxu0 %v87_v2  ;;  %v85_v9 = vld [vmem:[%s3798_s3 + $0x10] sm:$0xff]  ;;  %244 = vmatpush1.msra.mxu1 %v89_v7  ;;  %v109_v10 = vld [vmem:[%s3800_s5 + $0x78] sm:$0xff]  ;;  %v106_v14 = vld [vmem:[%s3800_s5 + $0x60] sm:$0xff]  ;;  %vm2899_vm13 = vmmov 0   ;;  %vm2453_vm14 = vcmask 64512   ;;  %s2900_s0 = smov [#allocation5]  }
  0x14   :  { %168 = vmatprep.subr.mxu0 %v84_v3  ;;  %245 = vmatprep.subr.mxu1 %v86_v8  ;;  %v108_v12 = vld [vmem:[%s3800_s5 + $0x70] sm:$0xff]  ;;  %v105_v15 = vld [vmem:[%s3800_s5 + $0x58] sm:$0xff]  ;;  %v103_v17 = vld [vmem:[%s3800_s5 + $0x48] sm:$0xff]  ;;  %3859 = vst [vmem:[#allocation8_spill] sm:$0xff] %v3075_v28  ;;  %v3078_v29 = vsub.s32 0, %v3075_v28  ;;  %vm370_vm1 = vcmp.lt.s32.totalorder %v3085_v31, 32 }
  0x15   :  { %169 = vmatpush1.msra.mxu0 %v83_v4  ;;  %246 = vmatpush1.msra.mxu1 %v85_v9  ;;  %v104_v16 = vld [vmem:[%s3800_s5 + $0x50] sm:$0xff]  ;;  %v102_v18 = vld [vmem:[%s3800_s5 + $0x40] sm:$0xff]  ;;  %v101_v19 = vld [vmem:[%s3800_s5 + $0x38] sm:$0xff]  ;;  %3860 = vst [vmem:[#allocation9_spill] sm:$0xff] %v3085_v31  ;;  %v3813_v35 = vsub.s32 1, %v3075_v28  ;;  %v3814_v38 = vsub.s32 2, %v3075_v28 }
  0x16   :  { %v81_v5 = vld [vmem:[%s3858_s22] sm:$0xff]  ;;  %v82_v11 = vld [vmem:[%s3858_s22 + $0x8] sm:$0xff]  ;;  %2621 = vmatprep.subr.mxu0 %v109_v10  ;;  %v100_v20 = vld [vmem:[%s3800_s5 + $0x30] sm:$0xff]  ;;  %2787 = vset.pattern.permute.xlu0 %v2895_v50  ;;  %vm815_vm2 = vcmp.ge.s32.totalorder %v3085_v31, 64  ;;  %vm816_vm3 = vcmp.lt.s32.totalorder %v3085_v31, 96  ;;  %vm1035_vm5 = vcmp.ge.s32.totalorder %v3085_v31, 96 }
  0x17   :  { %2497 = vmatmul.mubr.msk.f32.vlgmr.msra.gmra.mxu0 %vm72_vm0, %v81_v5  ;;  %2499 = vmatmul.mubr.msk.f32.vlgmr.msra.gmra.mxu1 %vm72_vm0, %v81_v5  ;;  %v99_v21 = vld [vmem:[%s3800_s5 + $0x28] sm:$0xff]  ;;  %v98_v22 = vld [vmem:[%s3800_s5 + $0x20] sm:$0xff]  ;;  %v97_v23 = vld [vmem:[%s3800_s5 + $0x18] sm:$0xff]  ;;  %vm595_vm8 = vcmp.ge.s32.totalorder %v3085_v31, 32  ;;  %vm596_vm9 = vcmp.lt.s32.totalorder %v3085_v31, 64  ;;  %s2488_s17 = sshll.u32 %s2900_s0, 4  ;;  %s2489_s17 = int_to_ptr.vmem [resolvable:$true] %s2488_s17 }
  0x18   :  { %208 = vmatprep.mubr.f32.mxu0 %v3815_v0  ;;  %285 = vmatprep.mubr.f32.mxu1 %v3815_v0  ;;  %v96_v24 = vld [vmem:[%s3800_s5 + $0x10] sm:$0xff]  ;;  %v95_v25 = vld [vmem:[%s3800_s5 + $0x8] sm:$0xff]  ;;  %v94_v26 = vld [vmem:[%s3800_s5] sm:$0xff]  ;;  %p2872_p6 = scmp.lt.s32.totalorder %s2489_s17, %s2489_s17 }
  0x19   :  { %2622 = vmatpush3.msra.mxu0 %v109_v10  ;;  %v3083_v30 = vld [vmem:[%s3799_s4] sm:$0xf]  ;;  %vm3139_vm4 = vmand %vm815_vm2, %vm816_vm3  ;;  %v3181_v61 = vld [vmem:[%s3796_s1 + $0x8] sm:$0xff]  ;;  %v2896_v10 = vmov 1   ;;  %s2867_s4 = scalar_lea.vmem %s2489_s17, 128 }
  0x1a   :  { %2623 = vmatprep.subr.mxu0 %v108_v12  ;;  %v115_v32 = vrot.slane %v3083_v30, %v3078_v29  ;;  %v119_v41 = vrot.slane %v3083_v30, %v3813_v35  ;;  %v123_v45 = vrot.slane %v3083_v30, %v3814_v38  ;;  %v3862_v51 = vsel %vm3139_vm4, 4294967295, %v3861_v51  ;;  %v3170_v56 = vld [vmem:[%s3796_s1] sm:$0xff]  ;;  %v3188_v3 = vld [vmem:[%s3797_s2 + $0x8] sm:$0xff]  ;;  %2788 = vset.pattern.permute.xlu1 %v2896_v10  ;;  %vm3209_vm10 = vmand %vm595_vm8, %vm596_vm9  ;;  %p2868_p5 = scmp.ne.s32.totalorder %s2489_s17, %s2867_s4  ;;  %p2873_p7 = scmp.lt.s32.totalorder %s2867_s4, %s2867_s4 }
  0x1b   :  { %2498 = vmatmul.mubr.msk.f32.gmra.mxu0 %vm72_vm0, %v82_v11  ;;  %2500 = vmatmul.mubr.msk.f32.gmra.mxu1 %vm72_vm0, %v82_v11  ;;  %3863 = vst [vmem:[#allocation10_spill] sm:$0xff] %v3862_v51  ;;  %v3176_v59 = vld [vmem:[%s3797_s2] sm:$0xff]  ;;  %vm71_vm7 = vcmp.gt.f32.partialorder %v3188_v3, 0.5  ;;  %v3865_v27 = vsel %vm3209_vm10, 4294967295, %v3864_v27  ;;  %v3494_v38 = vld [vmem:[#allocation2 + $0x78] sm:$0xff] }
  0x1c   :  { %2624 = vmatpush3.msra.mxu0 %v108_v12  ;;  %vm70_vm6 = vcmp.gt.f32.partialorder %v3176_v59, 0.5  ;;  %3866 = vst [vmem:[#allocation11_spill] sm:$0xff] %v3865_v27  ;;  %v3492_v35 = vld [vmem:[#allocation2 + $0x60] sm:$0xff]  ;;  %3884 = vst [vmem:[#allocation29_spill] sm:$0xff] %v3494_v38  ;;  %p2874_p8 = por %p2873_p7, %p2872_p6 }
  0x1d   :  { %2625 = vmatprep.subr.mxu0 %v107_v13  ;;  %3883 = vst [vmem:[#allocation28_spill] sm:$0xff] %v3492_v35 }
  0x1e   :  { %2626 = vmatpush3.msra.mxu0 %v107_v13  ;;  %p2875_p9 = pnand %p2874_p8, %p2868_p5 }
  0x1f   :  { %2627 = vmatprep.subr.mxu0 %v106_v14 }
  0x20   :  { %2628 = vmatpush3.msra.mxu0 %v106_v14 }
  0x21   :  { %2629 = vmatprep.subr.mxu0 %v105_v15 }
  0x22   :  { %2630 = vmatpush3.msra.mxu0 %v105_v15 }
  0x23   :  { %2631 = vmatprep.subr.mxu0 %v104_v16 }
  0x24   :  { %2632 = vmatpush3.msra.mxu0 %v104_v16 }
  0x25   :  { %2633 = vmatprep.subr.mxu0 %v103_v17 }
  0x26   :  { %2634 = vmatpush3.msra.mxu0 %v103_v17 }
  0x27   :  { %2635 = vmatprep.subr.mxu0 %v102_v18 }
  0x28   :  { %2636 = vmatpush3.msra.mxu0 %v102_v18 }
  0x29   :  { %2637 = vmatprep.subr.mxu0 %v101_v19 }
  0x2a   :  { %2638 = vmatpush3.msra.mxu0 %v101_v19 }
  0x2b   :  { %2639 = vmatprep.subr.mxu0 %v100_v20 }
  0x2c   :  { %2640 = vmatpush3.msra.mxu0 %v100_v20 }
  0x2d   :  { %2641 = vmatprep.subr.mxu0 %v99_v21 }
  0x2e   :  { %2642 = vmatpush3.msra.mxu0 %v99_v21 }
  0x2f   :  { %2643 = vmatprep.subr.mxu0 %v98_v22 }
  0x30   :  { %2644 = vmatpush3.msra.mxu0 %v98_v22 }
  0x31   :  { %2645 = vmatprep.subr.mxu0 %v97_v23 }
  0x32   :  { %2646 = vmatpush3.msra.mxu0 %v97_v23 }
  0x33   :  { %2647 = vmatprep.subr.mxu0 %v96_v24 }
  0x34   :  { %2648 = vmatpush3.msra.mxu0 %v96_v24 }
  0x35   :  { %2649 = vmatprep.subr.mxu0 %v95_v25 }
  0x36   :  { %2650 = vmatpush3.msra.mxu0 %v95_v25 }
  0x37   :  { %2651 = vmatprep.subr.mxu0 %v94_v26 }
  0x38   :  { %2652 = vmatpush3.msra.mxu0 %v94_v26 }
  0xd7   :  { %v204_v33 = vpop.f32.mrf.mxu0  ;;  %v281_v37 = vpop.f32.mrf.mxu1 }
  0xd8   :  { %v3090_v34 = vadd.f32 %v204_v33, %v115_v32  ;;  %v3119_v49 = vadd.f32 %v281_v37, %v123_v45 }
  0xd9   :  { %v206_v36 = vpop.f32.mrf.mxu0  ;;  %v3098_v40 = vpop.f32.mrf.mxu1 }
  0xda   :  { %2653 = vmatprep.mubr.f32.mxu0 %v3090_v34  ;;  %2660 = vmatprep.mubr.msk.f32.mxu1 %vm370_vm1, %v3090_v34  ;;  %v3111_v47 = vadd.f32 %v206_v36, %v119_v41 }
  0xdb   :  { %v210_v39 = vpop.f32.mrf.mxu0  ;;  %v287_v46 = vpop.f32.mrf.mxu1 }
  0xdc   :  { %v3103_v42 = vadd.f32 %v210_v39, %v115_v32  ;;  %v3116_v48 = vadd.f32 %v287_v46, %v123_v45  ;;  %v2897_v32 = vmov 2  }
  0xdd   :  { %v212_v43 = vpop.f32.mrf.mxu0  ;;  %v3165_v54 = vpop.f32.mrf.mxu1 }
  0xde   :  { %v3105_v44 = vadd.f32 %v212_v43, %v119_v41  ;;  %2654 = vmatmul.mubr.f32.vlgmr.msra.gmra.mxu0 %v3103_v42  ;;  %2691 = vmatprep.subr.msk.mxu0 %vm3139_vm4, %v3116_v48 }
  0xdf   :  { %2692 = vmatpush3.msk.msra.mxu0 %vm3139_vm4, %v3116_v48 }
  0xe0   :  { %2656 = vmatprep.subr.mxu1 %v3105_v44  ;;  %2693 = vmatprep.subr.msk.mxu0 %vm3139_vm4, %v3119_v49 }
  0xe1   :  { %2657 = vmatpush3.xpose.msra.mxu1 %v3105_v44  ;;  %2694 = vmatpush3.msk.msra.mxu0 %vm3139_vm4, %v3119_v49 }
  0xe2   :  { %2658 = vmatprep.subr.mxu1 %v3111_v47  ;;  %2705 = vmatprep.subr.msk.mxu0 %vm1035_vm5, %v3116_v48 }
  0xe5   :  { %2659 = vmatpush3.xpose.msra.mxu1 %v3111_v47 }
  0xe6   :  { %2663 = vmatprep.subr.msk.mxu1 %vm370_vm1, %v3116_v48 }
  0xe8   :  { %2661 = vmatmul.mubr.msk.f32.vlgmr.msra.gmra.mxu1 %vm370_vm1, %v3103_v42 }
  0xe9   :  { %2664 = vmatpush3.msk.msra.mxu1 %vm370_vm1, %v3116_v48 }
  0xea   :  { %2665 = vmatprep.subr.msk.mxu1 %vm370_vm1, %v3119_v49 }
  0xeb   :  { %2666 = vmatpush3.msk.msra.mxu1 %vm370_vm1, %v3119_v49 }
  0xec   :  { %2670 = vmatprep.subr.mxu1 %v3105_v44 }
 0x19e   :  { %v3159_v52 = vpop.f32.mrf.mxu0 }
 0x1a0   :  { %v3161_v53 = vpop.f32.mrf.mxu0 }
 0x1a1   :  { %378 = vperm.xlu0 %2787, %v3161_v53  }
 0x1a5   :  { %383 = vperm.xlu0 %2787, %v3159_v52  }
 0x1a8   :  { %v2662_v55 = vpop.f32.mrf.mxu1 }
 0x1a9   :  { %2789 = vset.pattern.permute.xlu0 %v2897_v32 }
 0x1aa   :  { %v454_v60 = vpop.f32.mrf.mxu1 }
 0x21c   :  { %v379_v57 = vpop.permute.xlu0 %378 }
 0x21d   :  { %v386_v58 = vmul.f32 %v379_v57, %v3170_v56 }
 0x21f   :  { %v455_v62 = vadd.f32 %v454_v60, %v386_v58 }
 0x220   :  { %v384_v63 = vpop.permute.xlu0 %383 }
 0x221   :  { %v387_v1 = vmul.f32 %v384_v63, %v3181_v61  ;;  %v463_v2 = vmul.f32 0.17677669, %v455_v62 }
 0x223   :  { %v460_v4 = vadd.f32 %v2662_v55, %v387_v1  ;;  %v465_v5 = vsel %vm70_vm6, %v463_v2, -1e+30  ;;  %v2898_v2 = vmov 3  }
 0x224   :  { %v467_v6 = vsel %vm72_vm0, %v465_v5, -inf }
 0x225   :  { %v464_v7 = vmul.f32 0.17677669, %v460_v4  ;;  %468 = vmax.xlane.f32.xlu1 %v467_v6 }
 0x227   :  { %v466_v8 = vsel %vm71_vm7, %v464_v7, -1e+30 }
 0x228   :  { %v470_v9 = vsel %vm72_vm0, %v466_v8, -inf }
 0x229   :  { %471 = vmax.xlane.f32.xlu1 %v470_v9 }
 0x2ae   :  { %v469_v11 = vpop.xlane.xlu1 %468 }
 0x2af   :  { %v473_v12 = vsub.f32 %v465_v5, %v469_v11 }
 0x2b1   :  { %v475_v13 = vmul.f32 1.442695, %v473_v12 }
 0x2b2   :  { %v472_v14 = vpop.xlane.xlu1 %471 }
 0x2b3   :  { %2793 = vpow2.f32 %v475_v13  ;;  %v474_v15 = vsub.f32 %v466_v8, %v472_v14 }
 0x2b5   :  { %v477_v16 = vmul.f32 1.442695, %v474_v15 }
 0x2b7   :  { %2795 = vpow2.f32 %v477_v16 }
 0x2c0   :  { %v2794_v17 = vpop.eup %2793 }
 0x2c1   :  { %v479_v18 = vsel %vm72_vm0, %v2794_v17, 0.0 }
 0x2c2   :  { %480 = vadd.xlane.f32.xlu0 %v479_v18 }
 0x2c4   :  { %v2796_v19 = vpop.eup %2795 }
 0x2c5   :  { %v482_v20 = vsel %vm72_vm0, %v2796_v19, 0.0 }
 0x2c6   :  { %483 = vadd.xlane.f32.xlu1 %v482_v20 }
 0x2d7   :  { %603 = vperm.xlu1 %2788, %v3161_v53  }
 0x2db   :  { %607 = vperm.xlu1 %2788, %v3159_v52  }
 0x2df   :  { %2790 = vset.pattern.permute.xlu1 %v2897_v32 }
 0x34b   :  { %v481_v21 = vpop.xlane.xlu0 %480 }
 0x34c   :  { %2797 = vrcp.f32 %v481_v21 }
 0x34f   :  { %v484_v22 = vpop.xlane.xlu1 %483 }
 0x350   :  { %2799 = vrcp.f32 %v484_v22 }
 0x353   :  { %v604_v33 = vpop.permute.xlu1 %603 }
 0x354   :  { %v610_v45 = vmul.f32 %v604_v33, %v3170_v56 }
 0x357   :  { %v608_v37 = vpop.permute.xlu1 %607 }
 0x358   :  { %v611_v41 = vmul.f32 %v608_v37, %v3181_v61 }
 0x359   :  { %v2798_v23 = vpop.eup %2797 }
 0x35a   :  { %v3201_v24 = vmul.f32 %v2798_v23, %v2794_v17 }
 0x35c   :  { %2667 = vmatprep.mubr.msk.f32.mxu1 %vm72_vm0, %v3201_v24 }
 0x35d   :  { %v2800_v25 = vpop.eup %2799 }
 0x35e   :  { %v3207_v26 = vmul.f32 %v2800_v25, %v2796_v19 }
 0x360   :  { %2668 = vmatmul.mubr.msk.f32.vlgmr.msra.gmra.mxu1 %vm72_vm0, %v3207_v26 }
 0x361   :  { %2671 = vmatpush3.xpose.msra.mxu1 %v3105_v44  ;;  %2674 = vmatprep.mubr.msk.f32.mxu1 %vm3209_vm10, %v3090_v34 }
 0x362   :  { %2672 = vmatprep.subr.mxu1 %v3111_v47 }
 0x365   :  { %2673 = vmatpush3.xpose.msra.mxu1 %v3111_v47 }
 0x366   :  { %2677 = vmatprep.subr.msk.mxu1 %vm3209_vm10, %v3116_v48 }
 0x368   :  { %2675 = vmatmul.mubr.msk.f32.vlgmr.msra.gmra.mxu1 %vm3209_vm10, %v3103_v42 }
 0x369   :  { %2678 = vmatpush3.msk.msra.mxu1 %vm3209_vm10, %v3116_v48 }
 0x36a   :  { %2679 = vmatprep.subr.msk.mxu1 %vm3209_vm10, %v3119_v49 }
 0x36b   :  { %2680 = vmatpush3.msk.msra.mxu1 %vm3209_vm10, %v3119_v49 }
 0x36c   :  { %2684 = vmatprep.subr.mxu1 %v3105_v44 }
 0x420   :  { %v3237_v36 = vpop.f32.mrf.mxu1 }
 0x422   :  { %v3239_v39 = vpop.f32.mrf.mxu1 }
 0x428   :  { %v2676_v43 = vpop.f32.mrf.mxu1 }
 0x429   :  { %v684_v46 = vadd.f32 %v2676_v43, %v611_v41 }
 0x42a   :  { %v678_v50 = vpop.f32.mrf.mxu1 }
 0x42b   :  { %v688_v55 = vmul.f32 0.17677669, %v684_v46  ;;  %v679_v57 = vadd.f32 %v678_v50, %v610_v45 }
 0x42d   :  { %v687_v58 = vmul.f32 0.17677669, %v679_v57  ;;  %v690_v60 = vsel %vm71_vm7, %v688_v55, -1e+30 }
 0x42e   :  { %v694_v62 = vsel %vm72_vm0, %v690_v60, -inf }
 0x42f   :  { %695 = vmax.xlane.f32.xlu0 %v694_v62  ;;  %v689_v63 = vsel %vm70_vm6, %v687_v58, -1e+30 }
 0x430   :  { %v691_v1 = vsel %vm72_vm0, %v689_v63, -inf }
 0x431   :  { %692 = vmax.xlane.f32.xlu1 %v691_v1 }
 0x442   :  { %827 = vperm.xlu1 %2790, %v3159_v52  }
 0x446   :  { %2791 = vset.pattern.permute.xlu1 %v2898_v2 }
 0x447   :  { %1043 = vperm.xlu1 %2791, %v3161_v53  }
 0x44b   :  { %1047 = vperm.xlu1 %2791, %v3159_v52  }
 0x4b8   :  { %v696_v4 = vpop.xlane.xlu0 %695 }
 0x4b9   :  { %v698_v5 = vsub.f32 %v690_v60, %v696_v4 }
 0x4ba   :  { %v693_v6 = vpop.xlane.xlu1 %692 }
 0x4bb   :  { %v697_v7 = vsub.f32 %v689_v63, %v693_v6  ;;  %v701_v8 = vmul.f32 1.442695, %v698_v5 }
 0x4bd   :  { %v699_v9 = vmul.f32 1.442695, %v697_v7 }
 0x4bf   :  { %2801 = vpow2.f32 %v699_v9 }
 0x4c0   :  { %2803 = vpow2.f32 %v701_v8 }
 0x4cc   :  { %v2802_v10 = vpop.eup %2801 }
 0x4cd   :  { %v703_v11 = vsel %vm72_vm0, %v2802_v10, 0.0  ;;  %v2804_v12 = vpop.eup %2803 }
 0x4ce   :  { %704 = vadd.xlane.f32.xlu0 %v703_v11  ;;  %v706_v13 = vsel %vm72_vm0, %v2804_v12, 0.0 }
 0x4d2   :  { %707 = vadd.xlane.f32.xlu0 %v706_v13 }
 0x4e8   :  { %823 = vperm.xlu0 %2789, %v3161_v53   ;;  %v828_v53 = vpop.permute.xlu1 %827 }
 0x4e9   :  { %v831_v22 = vmul.f32 %v828_v53, %v3181_v61 }
 0x4ec   :  { %2792 = vset.pattern.permute.xlu0 %v2898_v2  ;;  %v1044_v20 = vpop.permute.xlu1 %1043 }
 0x4ed   :  { %v1050_v57 = vmul.f32 %v1044_v20, %v3170_v56 }
 0x4f0   :  { %v1048_v37 = vpop.permute.xlu1 %1047 }
 0x4f1   :  { %v1051_v45 = vmul.f32 %v1048_v37, %v3181_v61 }
 0x557   :  { %v705_v52 = vpop.xlane.xlu0 %704 }
 0x558   :  { %2805 = vrcp.f32 %v705_v52 }
 0x55b   :  { %v708_v14 = vpop.xlane.xlu0 %707 }
 0x55c   :  { %2807 = vrcp.f32 %v708_v14 }
 0x563   :  { %v824_v21 = vpop.permute.xlu0 %823 }
 0x564   :  { %v830_v23 = vmul.f32 %v824_v21, %v3170_v56 }
 0x565   :  { %v2806_v15 = vpop.eup %2805 }
 0x566   :  { %v3255_v16 = vmul.f32 %v2806_v15, %v2802_v10 }
 0x568   :  { %2681 = vmatprep.mubr.msk.f32.mxu1 %vm72_vm0, %v3255_v16 }
 0x569   :  { %v2808_v17 = vpop.eup %2807 }
 0x56a   :  { %v3259_v18 = vmul.f32 %v2808_v17, %v2804_v12 }
 0x56c   :  { %2682 = vmatmul.mubr.msk.f32.vlgmr.msra.gmra.mxu1 %vm72_vm0, %v3259_v18 }
 0x56d   :  { %2685 = vmatpush3.xpose.msra.mxu1 %v3105_v44  ;;  %2688 = vmatprep.mubr.msk.f32.mxu1 %vm3139_vm4, %v3090_v34 }
 0x56e   :  { %2686 = vmatprep.subr.mxu1 %v3111_v47 }
 0x571   :  { %2687 = vmatpush3.xpose.msra.mxu1 %v3111_v47 }
 0x572   :  { %2698 = vmatprep.subr.mxu1 %v3105_v44 }
 0x574   :  { %2689 = vmatmul.mubr.msk.f32.vlgmr.msra.gmra.mxu1 %vm3139_vm4, %v3103_v42 }
 0x575   :  { %2699 = vmatpush3.xpose.msra.mxu1 %v3105_v44  ;;  %2702 = vmatprep.mubr.msk.f32.mxu1 %vm1035_vm5, %v3090_v34 }
 0x576   :  { %2700 = vmatprep.subr.mxu1 %v3111_v47 }
 0x579   :  { %2701 = vmatpush3.xpose.msra.mxu1 %v3111_v47 }
 0x57c   :  { %2703 = vmatmul.mubr.msk.f32.vlgmr.msra.gmra.mxu1 %vm1035_vm5, %v3103_v42 }
 0x57d   :  { %1531 = vmatprep.mubr.f32.mxu1 %v3815_v0 }
 0x62c   :  { %v3283_v19 = vpop.f32.mrf.mxu1 }
 0x62e   :  { %v3285_v44 = vpop.f32.mrf.mxu1 }
 0x634   :  { %v2690_v34 = vpop.f32.mrf.mxu1 }
 0x635   :  { %v904_v25 = vadd.f32 %v2690_v34, %v831_v22 }
 0x636   :  { %v898_v47 = vpop.f32.mrf.mxu1 }
 0x637   :  { %v908_v32 = vmul.f32 0.17677669, %v904_v25  ;;  %v899_v33 = vadd.f32 %v898_v47, %v830_v23  ;;  %v491_v47 = vmul.f32 %v3201_v24, %v3170_v56  ;;  %v716_v24 = vmul.f32 %v3259_v18, %v3181_v61 }
 0x639   :  { %v907_v42 = vmul.f32 0.17677669, %v899_v33  ;;  %v910_v41 = vsel %vm71_vm7, %v908_v32, -1e+30  ;;  %v493_v37 = vsel %vm72_vm0, %v491_v47, 0.0  ;;  %v3396_v47 = vld [vmem:[#allocation2 + $0x160] sm:$0xff] }
 0x63a   :  { %v914_v43 = vsel %vm72_vm0, %v910_v41, -inf }
 0x63b   :  { %915 = vmax.xlane.f32.xlu0 %v914_v43  ;;  %v909_v46 = vsel %vm70_vm6, %v907_v42, -1e+30  ;;  %v492_v42 = vmul.f32 %v3207_v26, %v3181_v61  ;;  %v76_v26 = vsel %vm72_vm0, %v3188_v3, -inf }
 0x63c   :  { %v2704_v50 = vpop.f32.mrf.mxu1  ;;  %v911_v55 = vsel %vm72_vm0, %v909_v46, -inf }
 0x63d   :  { %v1124_v58 = vadd.f32 %v2704_v50, %v1051_v45  ;;  %912 = vmax.xlane.f32.xlu1 %v911_v55  ;;  %v496_v43 = vsel %vm72_vm0, %v492_v42, 0.0  ;;  %v720_v50 = vsel %vm72_vm0, %v716_v24, 0.0  ;;  %v3408_v42 = vld [vmem:[#allocation2 + $0x140] sm:$0xff] }
 0x63e   :  { %v1118_v60 = vpop.f32.mrf.mxu1  ;;  %v3420_v24 = vld [vmem:[#allocation2 + $0x120] sm:$0xff] }
 0x63f   :  { %v1119_v62 = vadd.f32 %v1118_v60, %v1050_v57  ;;  %v1128_v63 = vmul.f32 0.17677669, %v1124_v58 }
 0x641   :  { %v1127_v1 = vmul.f32 0.17677669, %v1119_v62  ;;  %v1130_v5 = vsel %vm71_vm7, %v1128_v63, -1e+30 }
 0x642   :  { %v1134_v6 = vsel %vm72_vm0, %v1130_v5, -inf }
 0x643   :  { %v1129_v2 = vsel %vm70_vm6, %v1127_v1, -1e+30 }
 0x644   :  { %v1131_v4 = vsel %vm72_vm0, %v1129_v2, -inf }
 0x645   :  { %1132 = vmax.xlane.f32.xlu0 %v1131_v4 }
 0x649   :  { %1135 = vmax.xlane.f32.xlu0 %v1134_v6 }
 0x6c4   :  { %v916_v7 = vpop.xlane.xlu0 %915 }
 0x6c5   :  { %v918_v8 = vsub.f32 %v910_v41, %v916_v7  ;;  %v715_v41 = vmul.f32 %v3255_v16, %v3170_v56 }
 0x6c6   :  { %v913_v9 = vpop.xlane.xlu1 %912 }
 0x6c7   :  { %v921_v10 = vmul.f32 1.442695, %v918_v8  ;;  %v917_v11 = vsub.f32 %v909_v46, %v913_v9  ;;  %v717_v45 = vsel %vm72_vm0, %v715_v41, 0.0  ;;  %v73_v46 = vsel %vm72_vm0, %v3176_v59, -inf  ;;  %v3410_v41 = vld [vmem:[#allocation2 + $0x158] sm:$0xff] }
 0x6c9   :  { %2809 = vpow2.f32 %v921_v10  ;;  %v919_v12 = vmul.f32 1.442695, %v917_v11  ;;  %v3348_v11 = vld [vmem:[#allocation2 + $0x1e0] sm:$0xff] }
 0x6cb   :  { %2811 = vpow2.f32 %v919_v12  ;;  %v3354_v12 = vld [vmem:[#allocation2 + $0x1c8] sm:$0xff] }
 0x6ce   :  { %v1133_v13 = vpop.xlane.xlu0 %1132 }
 0x6cf   :  { %v1137_v52 = vsub.f32 %v1129_v2, %v1133_v13  ;;  %v3360_v13 = vld [vmem:[#allocation2 + $0x1c0] sm:$0xff] }
 0x6d1   :  { %v1139_v14 = vmul.f32 1.442695, %v1137_v52  ;;  %v3362_v52 = vld [vmem:[#allocation2 + $0x1d8] sm:$0xff] }
 0x6d2   :  { %v1136_v15 = vpop.xlane.xlu0 %1135 }
 0x6d3   :  { %2813 = vpow2.f32 %v1139_v14  ;;  %v1138_v17 = vsub.f32 %v1130_v5, %v1136_v15  ;;  %v3366_v14 = vld [vmem:[#allocation2 + $0x1a8] sm:$0xff]  ;;  %v3368_v15 = vld [vmem:[#allocation2 + $0x1d0] sm:$0xff] }
 0x6d5   :  { %v1141_v53 = vmul.f32 1.442695, %v1138_v17  ;;  %v3372_v17 = vld [vmem:[#allocation2 + $0x1a0] sm:$0xff] }
 0x6d6   :  { %v2810_v20 = vpop.eup %2809 }
 0x6d7   :  { %2815 = vpow2.f32 %v1141_v53  ;;  %v926_v21 = vsel %vm72_vm0, %v2810_v20, 0.0  ;;  %v3374_v53 = vld [vmem:[#allocation2 + $0x1b8] sm:$0xff] }
 0x6d8   :  { %v2812_v22 = vpop.eup %2811  ;;  %927 = vadd.xlane.f32.xlu0 %v926_v21  ;;  %v3380_v21 = vld [vmem:[#allocation2 + $0x1b0] sm:$0xff] }
 0x6d9   :  { %v923_v34 = vsel %vm72_vm0, %v2812_v22, 0.0 }
 0x6da   :  { %924 = vadd.xlane.f32.xlu1 %v923_v34  ;;  %v3386_v34 = vld [vmem:[#allocation2 + $0x198] sm:$0xff] }
 0x6e0   :  { %v2814_v23 = vpop.eup %2813 }
 0x6e1   :  { %v1143_v25 = vsel %vm72_vm0, %v2814_v23, 0.0 }
 0x6e2   :  { %1144 = vadd.xlane.f32.xlu1 %v1143_v25  ;;  %v3392_v25 = vld [vmem:[#allocation2 + $0x190] sm:$0xff] }
 0x6e4   :  { %v2816_v32 = vpop.eup %2815 }
 0x6e5   :  { %v1146_v33 = vsel %vm72_vm0, %v2816_v32, 0.0 }
 0x6e6   :  { %1147 = vadd.xlane.f32.xlu0 %v1146_v33  ;;  %494 = vadd.xlane.f32.xlu1 %v493_v37  ;;  %v3402_v33 = vld [vmem:[#allocation2 + $0x148] sm:$0xff]  ;;  %v3404_v37 = vld [vmem:[#allocation2 + $0x170] sm:$0xff] }
 0x6ea   :  { %497 = vadd.xlane.f32.xlu0 %v496_v43  ;;  %718 = vadd.xlane.f32.xlu1 %v717_v45  ;;  %v3414_v43 = vld [vmem:[#allocation2 + $0x128] sm:$0xff]  ;;  %v3416_v45 = vld [vmem:[#allocation2 + $0x150] sm:$0xff] }
 0x6ee   :  { %721 = vadd.xlane.f32.xlu0 %v720_v50  ;;  %74 = vmax.xlane.f32.xlu1 %v73_v46  ;;  %v3422_v46 = vld [vmem:[#allocation2 + $0x138] sm:$0xff]  ;;  %v3426_v50 = vld [vmem:[#allocation2 + $0x108] sm:$0xff] }
 0x6f2   :  { %77 = vmax.xlane.f32.xlu0 %v76_v26  ;;  %v3428_v26 = vld [vmem:[#allocation2 + $0x130] sm:$0xff] }
 0x761   :  { %v928_v16 = vpop.xlane.xlu0 %927 }
 0x762   :  { %2817 = vrcp.f32 %v928_v16  ;;  %v3432_v16 = vld [vmem:[#allocation2 + $0x100] sm:$0xff] }
 0x763   :  { %v925_v55 = vpop.xlane.xlu1 %924 }
 0x764   :  { %2819 = vrcp.f32 %v925_v55  ;;  %v3434_v55 = vld [vmem:[#allocation2 + $0x118] sm:$0xff] }
 0x765   :  { %3867 = vst [vmem:[#allocation12_spill] sm:$0xff] %v3434_v55 }
 0x76b   :  { %v1145_v57 = vpop.xlane.xlu1 %1144 }
 0x76c   :  { %2821 = vrcp.f32 %v1145_v57  ;;  %v3438_v57 = vld [vmem:[#allocation2 + $0xe8] sm:$0xff] }
 0x76f   :  { %v2818_v18 = vpop.eup %2817  ;;  %v1148_v58 = vpop.xlane.xlu0 %1147 }
 0x770   :  { %2823 = vrcp.f32 %v1148_v58  ;;  %v932_v60 = vmul.f32 %v2818_v18, %v2810_v20  ;;  %v3378_v20 = vld [vmem:[#allocation2 + $0x188] sm:$0xff]  ;;  %v3440_v18 = vld [vmem:[#allocation2 + $0x110] sm:$0xff]  ;;  %v3444_v58 = vld [vmem:[#allocation2 + $0xe0] sm:$0xff] }
 0x771   :  { %v2820_v62 = vpop.eup %2819  ;;  %3868 = vst [vmem:[#allocation13_spill] sm:$0xff] %v3440_v18 }
 0x772   :  { %v931_v59 = vmul.f32 %v2820_v62, %v2812_v22  ;;  %v936_v63 = vmul.f32 %v932_v60, %v3181_v61  ;;  %v3384_v22 = vld [vmem:[#allocation2 + $0x180] sm:$0xff]  ;;  %v3450_v62 = vld [vmem:[#allocation2 + $0xc8] sm:$0xff] }
 0x774   :  { %2695 = vmatprep.mubr.msk.f32.mxu0 %vm72_vm0, %v931_v59  ;;  %v940_v1 = vsel %vm72_vm0, %v936_v63, 0.0  ;;  %v935_v3 = vmul.f32 %v931_v59, %v3170_v56  ;;  %v3452_v59 = vld [vmem:[#allocation2 + $0xf0] sm:$0xff]  ;;  %v3456_v63 = vld [vmem:[#allocation2 + $0xc0] sm:$0xff] }
 0x775   :  { %941 = vadd.xlane.f32.xlu0 %v940_v1  ;;  %2696 = vmatmul.mubr.msk.f32.vlgmr.msra.gmra.mxu0 %vm72_vm0, %v932_v60  ;;  %v3446_v60 = vld [vmem:[#allocation2 + $0xf8] sm:$0xff]  ;;  %3870 = vst [vmem:[#allocation15_spill] sm:$0xff] %v3452_v59  ;;  %3871 = vst [vmem:[#allocation16_spill] sm:$0xff] %v3456_v63 }
 0x776   :  { %2706 = vmatpush3.msk.msra.mxu0 %vm1035_vm5, %v3116_v48  ;;  %v937_v2 = vsel %vm72_vm0, %v935_v3, 0.0  ;;  %3869 = vst [vmem:[#allocation14_spill] sm:$0xff] %v3446_v60  ;;  %v3458_v1 = vld [vmem:[#allocation2 + $0xd8] sm:$0xff]  ;;  %v3462_v3 = vld [vmem:[#allocation2 + $0xa8] sm:$0xff] }
 0x777   :  { %2707 = vmatprep.subr.msk.mxu0 %vm1035_vm5, %v3119_v49  ;;  %938 = vadd.xlane.f32.xlu1 %v937_v2  ;;  %3872 = vst [vmem:[#allocation17_spill] sm:$0xff] %v3458_v1  ;;  %3873 = vst [vmem:[#allocation18_spill] sm:$0xff] %v3462_v3  ;;  %v3464_v2 = vld [vmem:[#allocation2 + $0xd0] sm:$0xff] }
 0x778   :  { %2708 = vmatpush3.msk.msra.mxu0 %vm1035_vm5, %v3119_v49  ;;  %v3345_v49 = vld [vmem:[#allocation2 + $0x1e8] sm:$0xff]  ;;  %3874 = vst [vmem:[#allocation19_spill] sm:$0xff] %v3464_v2 }
 0x779   :  { %v2822_v4 = vpop.eup %2821  ;;  %1392 = vmatprep.subr.mxu0 %v3345_v49 }
 0x77a   :  { %v1151_v5 = vmul.f32 %v2822_v4, %v2814_v23  ;;  %v3390_v23 = vld [vmem:[#allocation2 + $0x168] sm:$0xff]  ;;  %v3468_v4 = vld [vmem:[#allocation2 + $0xa0] sm:$0xff] }
 0x77b   :  { %3875 = vst [vmem:[#allocation20_spill] sm:$0xff] %v3468_v4 }
 0x77c   :  { %2709 = vmatprep.mubr.msk.f32.mxu0 %vm72_vm0, %v1151_v5  ;;  %v1155_v6 = vmul.f32 %v1151_v5, %v3170_v56  ;;  %v3350_v56 = vld [vmem:[#allocation2 + $0x1f8] sm:$0xff] }
 0x77d   :  { %v2824_v7 = vpop.eup %2823  ;;  %1467 = vmatprep.subr.mxu1 %v3350_v56  ;;  %v3470_v5 = vld [vmem:[#allocation2 + $0xb8] sm:$0xff] }
 0x77e   :  { %v1157_v48 = vsel %vm72_vm0, %v1155_v6, 0.0  ;;  %v1152_v8 = vmul.f32 %v2824_v7, %v2816_v32  ;;  %v3398_v32 = vld [vmem:[#allocation2 + $0x178] sm:$0xff]  ;;  %3876 = vst [vmem:[#allocation21_spill] sm:$0xff] %v3470_v5  ;;  %v3474_v6 = vld [vmem:[#allocation2 + $0x88] sm:$0xff]  ;;  %v3476_v7 = vld [vmem:[#allocation2 + $0xb0] sm:$0xff] }
 0x77f   :  { %1158 = vadd.xlane.f32.xlu1 %v1157_v48  ;;  %3877 = vst [vmem:[#allocation22_spill] sm:$0xff] %v3474_v6  ;;  %3878 = vst [vmem:[#allocation23_spill] sm:$0xff] %v3476_v7  ;;  %v3480_v48 = vld [vmem:[#allocation2 + $0x80] sm:$0xff] }
 0x780   :  { %2710 = vmatmul.mubr.msk.f32.vlgmr.msra.gmra.mxu0 %vm72_vm0, %v1152_v8  ;;  %v1156_v9 = vmul.f32 %v1152_v8, %v3181_v61  ;;  %v3356_v61 = vld [vmem:[#allocation2 + $0x1f0] sm:$0xff]  ;;  %3879 = vst [vmem:[#allocation24_spill] sm:$0xff] %v3480_v48  ;;  %v3482_v8 = vld [vmem:[#allocation2 + $0x98] sm:$0xff] }
 0x781   :  { %1456 = vmatprep.mubr.f32.mxu0 %v3815_v0  ;;  %1393 = vmatpush1.msra.mxu0 %v3348_v11  ;;  %3880 = vst [vmem:[#allocation25_spill] sm:$0xff] %v3482_v8  ;;  %v3498_v0 = vld [vmem:[#allocation2 + $0x48] sm:$0xff] }
 0x782   :  { %v1160_v10 = vsel %vm72_vm0, %v1156_v9, 0.0  ;;  %1394 = vmatprep.subr.mxu0 %v3354_v12  ;;  %1468 = vmatpush1.msra.mxu1 %v3356_v61  ;;  %v3486_v9 = vld [vmem:[#allocation2 + $0x68] sm:$0xff]  ;;  %3885 = vst [vmem:[#allocation30_spill] sm:$0xff] %v3498_v0 }
 0x783   :  { %1161 = vadd.xlane.f32.xlu0 %v1160_v10  ;;  %1395 = vmatpush1.msra.mxu0 %v3360_v13  ;;  %3881 = vst [vmem:[#allocation26_spill] sm:$0xff] %v3486_v9  ;;  %v3488_v10 = vld [vmem:[#allocation2 + $0x90] sm:$0xff] }
 0x784   :  { %1469 = vmatprep.subr.mxu1 %v3362_v52  ;;  %1396 = vmatprep.subr.mxu0 %v3366_v14  ;;  %3882 = vst [vmem:[#allocation27_spill] sm:$0xff] %v3488_v10 }
 0x785   :  { %1470 = vmatpush1.msra.mxu1 %v3368_v15  ;;  %1397 = vmatpush1.msra.mxu0 %v3372_v17 }
 0x786   :  { %1471 = vmatprep.subr.mxu1 %v3374_v53  ;;  %1398 = vmatprep.subr.mxu0 %v3378_v20 }
 0x787   :  { %1472 = vmatpush1.msra.mxu1 %v3380_v21  ;;  %1399 = vmatpush1.msra.mxu0 %v3384_v22 }
 0x788   :  { %1473 = vmatprep.subr.mxu1 %v3386_v34  ;;  %1400 = vmatprep.subr.mxu0 %v3390_v23 }
 0x789   :  { %1474 = vmatpush1.msra.mxu1 %v3392_v25  ;;  %1401 = vmatpush1.msra.mxu0 %v3396_v47 }
 0x78a   :  { %1475 = vmatprep.subr.mxu1 %v3398_v32  ;;  %1402 = vmatprep.subr.mxu0 %v3402_v33 }
 0x78b   :  { %1476 = vmatpush1.msra.mxu1 %v3404_v37  ;;  %1403 = vmatpush1.msra.mxu0 %v3408_v42 }
 0x78c   :  { %1477 = vmatprep.subr.mxu1 %v3410_v41  ;;  %1404 = vmatprep.subr.mxu0 %v3414_v43 }
 0x78d   :  { %1478 = vmatpush1.msra.mxu1 %v3416_v45  ;;  %1405 = vmatpush1.msra.mxu0 %v3420_v24 }
 0x78e   :  { %1479 = vmatprep.subr.mxu1 %v3422_v46  ;;  %1406 = vmatprep.subr.mxu0 %v3426_v50 }
 0x78f   :  { %1480 = vmatpush1.msra.mxu1 %v3428_v26  ;;  %1407 = vmatpush1.msra.mxu0 %v3432_v16 }
 0x790   :  { %1481 = vmatprep.subr.mxu1 %v3434_v55  ;;  %1408 = vmatprep.subr.mxu0 %v3438_v57 }
 0x791   :  { %1482 = vmatpush1.msra.mxu1 %v3440_v18  ;;  %1409 = vmatpush1.msra.mxu0 %v3444_v58 }
 0x792   :  { %1483 = vmatprep.subr.mxu1 %v3446_v60  ;;  %1410 = vmatprep.subr.mxu0 %v3450_v62 }
 0x793   :  { %1484 = vmatpush1.msra.mxu1 %v3452_v59  ;;  %1411 = vmatpush1.msra.mxu0 %v3456_v63 }
 0x794   :  { %1485 = vmatprep.subr.mxu1 %v3458_v1  ;;  %1412 = vmatprep.subr.mxu0 %v3462_v3 }
 0x795   :  { %1486 = vmatpush1.msra.mxu1 %v3464_v2  ;;  %1413 = vmatpush1.msra.mxu0 %v3468_v4  ;;  %v3516_v2 = vld [vmem:[#allocation2 + $0x38] sm:$0xff] }
 0x796   :  { %1487 = vmatprep.subr.mxu1 %v3470_v5  ;;  %1414 = vmatprep.subr.mxu0 %v3474_v6  ;;  %v3506_v5 = vld [vmem:[#allocation2 + $0x58] sm:$0xff]  ;;  %3892 = vst [vmem:[#allocation37_spill] sm:$0xff] %v3516_v2 }
 0x797   :  { %1488 = vmatpush1.msra.mxu1 %v3476_v7  ;;  %1415 = vmatpush1.msra.mxu0 %v3480_v48  ;;  %v3500_v7 = vld [vmem:[#allocation2 + $0x70] sm:$0xff]  ;;  %3888 = vst [vmem:[#allocation33_spill] sm:$0xff] %v3506_v5 }
 0x798   :  { %1489 = vmatprep.subr.mxu1 %v3482_v8  ;;  %1416 = vmatprep.subr.mxu0 %v3486_v9  ;;  %3886 = vst [vmem:[#allocation31_spill] sm:$0xff] %v3500_v7  ;;  %v3504_v8 = vld [vmem:[#allocation2 + $0x40] sm:$0xff] }
 0x799   :  { %1490 = vmatpush1.msra.mxu1 %v3488_v10  ;;  %1417 = vmatpush1.msra.mxu0 %v3492_v35  ;;  %3887 = vst [vmem:[#allocation32_spill] sm:$0xff] %v3504_v8  ;;  %v3508_v10 = vld [vmem:[#allocation2 + $0x28] sm:$0xff]  ;;  %v3512_v35 = vld [vmem:[#allocation2 + $0x50] sm:$0xff]  ;;  %v3524_v9 = vld [vmem:[#allocation2] sm:$0xff] }
 0x79a   :  { %1491 = vmatprep.subr.mxu1 %v3494_v38  ;;  %1418 = vmatprep.subr.mxu0 %v3498_v0  ;;  %3889 = vst [vmem:[#allocation34_spill] sm:$0xff] %v3508_v10  ;;  %3890 = vst [vmem:[#allocation35_spill] sm:$0xff] %v3512_v35  ;;  %v3514_v38 = vld [vmem:[#allocation2 + $0x20] sm:$0xff]  ;;  %v3522_v0 = vld [vmem:[#allocation2 + $0x30] sm:$0xff] }
 0x79b   :  { %1492 = vmatpush1.msra.mxu1 %v3500_v7  ;;  %1419 = vmatpush1.msra.mxu0 %v3504_v8  ;;  %3891 = vst [vmem:[#allocation36_spill] sm:$0xff] %v3514_v38  ;;  %v3520_v7 = vld [vmem:[#allocation2 + $0x8] sm:$0xff]  ;;  %3894 = vst [vmem:[#allocation39_spill] sm:$0xff] %v3522_v0  ;;  %v3530_v8 = vld [vmem:[#allocation2 + $0x10] sm:$0xff] }
 0x79c   :  { %1493 = vmatprep.subr.mxu1 %v3506_v5  ;;  %1420 = vmatprep.subr.mxu0 %v3508_v10  ;;  %3893 = vst [vmem:[#allocation38_spill] sm:$0xff] %v3520_v7  ;;  %3895 = vst [vmem:[#allocation40_spill] sm:$0xff] %v3524_v9  ;;  %v3528_v5 = vld [vmem:[#allocation2 + $0x18] sm:$0xff] }
 0x79d   :  { %1494 = vmatpush1.msra.mxu1 %v3512_v35  ;;  %1421 = vmatpush1.msra.mxu0 %v3514_v38  ;;  %3896 = vst [vmem:[#allocation41_spill] sm:$0xff] %v3528_v5  ;;  %3897 = vst [vmem:[#allocation42_spill] sm:$0xff] %v3530_v8  ;;  %v495_v35 = vpop.xlane.xlu1 %494  ;;  %v110_v38 = vld [vmem:[%s3801_s6] sm:$0x1] }
 0x79e   :  { %1495 = vmatprep.subr.mxu1 %v3516_v2  ;;  %1422 = vmatprep.subr.mxu0 %v3520_v7  ;;  %v498_v2 = vpop.xlane.xlu0 %497  ;;  %v499_v7 = vsel %vm370_vm1, %v110_v38, 0.0  ;;  %v943_v48 = vsel %vm3139_vm4, %v110_v38, 0.0 }
 0x79f   :  { %1496 = vmatpush1.msra.mxu1 %v3522_v0  ;;  %1423 = vmatpush1.msra.mxu0 %v3524_v9  ;;  %v503_v9 = vrot.slane %v499_v7, %v3078_v29  ;;  %v947_v7 = vrot.slane %v943_v48, %v3078_v29 }
 0x7a0   :  { %1497 = vmatprep.subr.mxu1 %v3528_v5  ;;  %1545 = vmatprep.subr.mxu0 %v3345_v49  ;;  %v3851_v49 = vsub.s32 3, %v3075_v28 }
 0x7a1   :  { %1498 = vmatpush1.msra.mxu1 %v3530_v8  ;;  %v719_v0 = vpop.xlane.xlu1 %718  ;;  %v723_v8 = vsel %vm3209_vm10, %v110_v38, 0.0  ;;  %v504_v59 = vmul.f32 %v503_v9, %v495_v35  ;;  %v505_v6 = vmul.f32 %v503_v9, %v498_v2  ;;  %v1163_v35 = vsel %vm1035_vm5, %v110_v38, 0.0 }
 0x7a2   :  { %1615 = vmatprep.subr.mxu1 %v3350_v56  ;;  %v722_v10 = vpop.xlane.xlu0 %721  ;;  %v727_v56 = vrot.slane %v723_v8, %v3078_v29  ;;  %v127_v4 = vrot.slane %v3083_v30, %v3851_v49 }
 0x7a3   :  { %v579_v55 = vadd.f32 %v3239_v39, %v504_v59  ;;  %v584_v51 = vadd.f32 %v3237_v36, %v505_v6  ;;  %v1167_v36 = vrot.slane %v1163_v35, %v3078_v29 }
 0x7a4   :  { %v728_v27 = vmul.f32 %v727_v56, %v719_v0  ;;  %v729_v18 = vmul.f32 %v727_v56, %v722_v10  ;;  %v284_v0 = vadd.f32 %v3098_v40, %v127_v4  ;;  %v290_v10 = vadd.f32 %v3165_v54, %v127_v4 }
 0x7a5   :  { %v75_v5 = vpop.xlane.xlu1 %74 }
 0x7a6   :  { %v78_v1 = vpop.xlane.xlu0 %77  ;;  %vm79_vm11 = vcmp.gt.f32.partialorder %v75_v5, 0.5  ;;  %v803_v56 = vadd.f32 %v3285_v44, %v728_v27  ;;  %v808_v39 = vadd.f32 %v3283_v19, %v729_v18 }
 0x7a7   :  { %vm80_vm12 = vcmp.gt.f32.partialorder %v78_v1, 0.5  ;;  %v591_v9 = vsel %vm79_vm11, %v579_v55, 0.0 }
 0x7a8   :  { %v592_v30 = vsel %vm80_vm12, %v584_v51, 0.0  ;;  %v593_v31 = vadd.f32 %v591_v9, %v284_v0  ;;  %v811_v51 = vsel %vm79_vm11, %v803_v56, 0.0 }
 0x7a9   :  { %v594_v28 = vadd.f32 %v592_v30, %v290_v10 }
 0x7aa   :  { %v813_v18 = vadd.f32 %v811_v51, %v593_v31 }
 0x7fe   :  { %v942_v3 = vpop.xlane.xlu0 %941 }
 0x7ff   :  { %v949_v49 = vmul.f32 %v947_v7, %v942_v3  ;;  %v812_v3 = vsel %vm80_vm12, %v808_v39, 0.0 }
 0x800   :  { %v939_v8 = vpop.xlane.xlu1 %938  ;;  %v814_v44 = vadd.f32 %v812_v3, %v594_v28  ;;  %v1257_v28 = vld [vmem:[%s3804_s9] sm:$0x1] }
 0x801   :  { %v948_v48 = vmul.f32 %v947_v7, %v939_v8 }
 0x808   :  { %v1159_v55 = vpop.xlane.xlu1 %1158 }
 0x809   :  { %v1168_v7 = vmul.f32 %v1167_v36, %v1159_v55 }
 0x80c   :  { %v1162_v59 = vpop.xlane.xlu0 %1161 }
 0x80d   :  { %v1169_v63 = vmul.f32 %v1167_v36, %v1162_v59 }
 0x835   :  { %v2697_v60 = vpop.f32.mrf.mxu0 }
 0x836   :  { %v1028_v6 = vadd.f32 %v2697_v60, %v949_v49 }
 0x837   :  { %v1022_v2 = vpop.f32.mrf.mxu0 }
 0x838   :  { %v1023_v38 = vadd.f32 %v1022_v2, %v948_v48  ;;  %v1032_v54 = vsel %vm80_vm12, %v1028_v6, 0.0 }
 0x839   :  { %v1034_v8 = vadd.f32 %v1032_v54, %v814_v44 }
 0x83a   :  { %v1031_v27 = vsel %vm79_vm11, %v1023_v38, 0.0 }
 0x83b   :  { %v1033_v35 = vadd.f32 %v1031_v27, %v813_v18 }
 0x840   :  { %v2711_v40 = vpop.f32.mrf.mxu0 }
 0x841   :  { %v1248_v19 = vadd.f32 %v2711_v40, %v1169_v63 }
 0x842   :  { %v1242_v4 = vpop.f32.mrf.mxu0 }
 0x843   :  { %v1252_v60 = vsel %vm80_vm12, %v1248_v19, 0.0  ;;  %v1243_v49 = vadd.f32 %v1242_v4, %v1168_v7  ;;  %v2525_v4 = vld [vmem:[%s3802_s7] ss:$0 sm:$0xff] }
 0x844   :  { %v1254_v9 = vadd.f32 %v1252_v60, %v1034_v8 }
 0x845   :  { %v1251_v2 = vsel %vm79_vm11, %v1243_v49, 0.0 }
 0x846   :  { %v1253_v30 = vadd.f32 %v1251_v2, %v1033_v35  ;;  %v2526_v35 = vld [vmem:[%s3803_s8] ss:$0 sm:$0xff] }
 0x848   :  { %v1258_v48 = vadd.f32 %v1254_v9, %v1253_v30 }
 0x84a   :  { %v1259_v0 = vrot.slane %v1258_v48, 4 }
 0x84c   :  { %v1260_v10 = vadd.f32 %v1259_v0, %v1258_v48 }
 0x84e   :  { %v1261_v56 = vrot.slane %v1260_v10, 2 }
 0x850   :  { %v1262_v39 = vadd.f32 %v1261_v56, %v1260_v10  ;;  %v3898_v10 = vmov 0.0  }
 0x852   :  { %v1263_v59 = vrot.slane %v1262_v39, 1 }
 0x854   :  { %v1264_v36 = vadd.f32 %v1263_v59, %v1262_v39  ;;  %v3929_v39 = vld [vmem:[#allocation42_spill] sm:$0xff]  ;;  %v1370_v59 = vld [vmem:[%s3806_s11] sm:$0xf] }
 0x856   :  { %v1266_v31 = vmul.f32 0.0625, %v1264_v36  ;;  %v3930_v36 = vld [vmem:[#allocation8_spill] sm:$0xff] }
 0x858   :  { %v1267_v63 = vmul.f32 %v1266_v31, %v1257_v28  ;;  %v3931_v28 = vsub.s32 3, %v3930_v36 }
 0x85a   :  { %v1271_v1 = vrot.slane %v1267_v63, %v3078_v29  ;;  %v3662_v31 = vrot.slane %v1370_v59, %v3931_v28 }
 0x85c   :  { %v1272_v6 = vsub.f32 %v1253_v30, %v1271_v1  ;;  %v1273_v5 = vsub.f32 %v1254_v9, %v1271_v1 }
 0x85e   :  { %v1274_v38 = vmul.f32 %v1272_v6, %v1272_v6  ;;  %v1275_v55 = vmul.f32 %v1273_v5, %v1273_v5  ;;  %v1290_v60 = vmul.f32 %v2525_v4, %v1272_v6  ;;  %v1291_v49 = vmul.f32 %v2525_v4, %v1273_v5 }
 0x860   :  { %v1276_v51 = vadd.f32 %v1275_v55, %v1274_v38  ;;  %v3932_v55 = vsub.s32 2, %v3930_v36 }
 0x862   :  { %v1277_v3 = vrot.slane %v1276_v51, 4 }
 0x864   :  { %v1278_v40 = vadd.f32 %v1277_v3, %v1276_v51  ;;  %v1383_v51 = vrot.slane %v1370_v59, %v3932_v55 }
 0x866   :  { %v1279_v7 = vrot.slane %v1278_v40, 2 }
 0x868   :  { %v1280_v54 = vadd.f32 %v1279_v7, %v1278_v40  ;;  %v3933_v40 = vsub.s32 1, %v3930_v36 }
 0x86a   :  { %v1281_v27 = vrot.slane %v1280_v54, 1  ;;  %v1379_v7 = vrot.slane %v1370_v59, %v3933_v40 }
 0x86c   :  { %v1282_v19 = vadd.f32 %v1281_v27, %v1280_v54 }
 0x86e   :  { %v1283_v44 = vmul.f32 0.0625, %v1282_v19 }
 0x870   :  { %v1292_v18 = vadd.f32 1e-05, %v1283_v44 }
 0x872   :  { %2825 = vrsqrt.f32 %v1292_v18 }
 0x87f   :  { %v2826_v8 = vpop.eup %2825 }
 0x880   :  { %v1294_v2 = vmul.f32 %v2826_v8, %v1290_v60  ;;  %v1295_v9 = vmul.f32 %v2826_v8, %v1291_v49 }
 0x882   :  { %v1302_v30 = vadd.f32 %v2526_v35, %v1294_v2  ;;  %v1303_v0 = vadd.f32 %v2526_v35, %v1295_v9  ;;  %v1375_v2 = vrot.slane %v1370_v59, %v3078_v29 }
 0x884   :  { %v1304_v48 = vmax.f32 %v1302_v30, 0.0  ;;  %v1305_v56 = vmax.f32 %v1303_v0, 0.0 }
 0x886   :  { %1457 = vmatmul.mubr.f32.vlgmr.msra.gmra.mxu0 %v1304_v48  ;;  %1532 = vmatmul.mubr.f32.vlgmr.msra.gmra.mxu1 %v1304_v48 }
 0x887   :  { %1546 = vmatpush1.msra.mxu0 %v3348_v11  ;;  %1461 = vmatprep.mubr.f32.mxu0 %v3898_v10  ;;  %v3899_v11 = vld [vmem:[#allocation16_spill] sm:$0xff] }
 0x888   :  { %1547 = vmatprep.subr.mxu0 %v3354_v12  ;;  %1537 = vmatprep.mubr.f32.mxu1 %v3898_v10  ;;  %v3900_v12 = vld [vmem:[#allocation12_spill] sm:$0xff] }
 0x889   :  { %1548 = vmatpush1.msra.mxu0 %v3360_v13  ;;  %1616 = vmatpush1.msra.mxu1 %v3356_v61  ;;  %v3901_v61 = vld [vmem:[#allocation18_spill] sm:$0xff]  ;;  %v3902_v13 = vld [vmem:[#allocation13_spill] sm:$0xff] }
 0x88a   :  { %1549 = vmatprep.subr.mxu0 %v3366_v14  ;;  %1462 = vmatmul.mubr.f32.gmra.mxu0 %v1305_v56  ;;  %v3904_v14 = vld [vmem:[#allocation14_spill] sm:$0xff] }
 0x88b   :  { %1538 = vmatmul.mubr.f32.gmra.mxu1 %v1305_v56  ;;  %1550 = vmatpush1.msra.mxu0 %v3372_v17  ;;  %v3906_v17 = vld [vmem:[#allocation15_spill] sm:$0xff] }
 0x88c   :  { %1551 = vmatprep.subr.mxu0 %v3378_v20  ;;  %1609 = vmatprep.mubr.f32.mxu0 %v3898_v10  ;;  %v3908_v20 = vld [vmem:[#allocation17_spill] sm:$0xff] }
 0x88d   :  { %1552 = vmatpush1.msra.mxu0 %v3384_v22  ;;  %1617 = vmatprep.subr.mxu1 %v3362_v52  ;;  %v3903_v52 = vld [vmem:[#allocation20_spill] sm:$0xff]  ;;  %v3910_v22 = vld [vmem:[#allocation19_spill] sm:$0xff] }
 0x88e   :  { %1553 = vmatprep.subr.mxu0 %v3390_v23  ;;  %1618 = vmatpush1.msra.mxu1 %v3368_v15  ;;  %v3905_v15 = vld [vmem:[#allocation22_spill] sm:$0xff]  ;;  %v3912_v23 = vld [vmem:[#allocation21_spill] sm:$0xff] }
 0x88f   :  { %1554 = vmatpush1.msra.mxu0 %v3396_v47  ;;  %1619 = vmatprep.subr.mxu1 %v3374_v53  ;;  %v3907_v53 = vld [vmem:[#allocation24_spill] sm:$0xff]  ;;  %v3914_v47 = vld [vmem:[#allocation23_spill] sm:$0xff] }
 0x890   :  { %1555 = vmatprep.subr.mxu0 %v3402_v33  ;;  %1620 = vmatpush1.msra.mxu1 %v3380_v21  ;;  %v3909_v21 = vld [vmem:[#allocation26_spill] sm:$0xff]  ;;  %v3916_v33 = vld [vmem:[#allocation25_spill] sm:$0xff] }
 0x891   :  { %1556 = vmatpush1.msra.mxu0 %v3408_v42  ;;  %1621 = vmatprep.subr.mxu1 %v3386_v34  ;;  %v3911_v34 = vld [vmem:[#allocation28_spill] sm:$0xff]  ;;  %v3918_v42 = vld [vmem:[#allocation27_spill] sm:$0xff] }
 0x892   :  { %1557 = vmatprep.subr.mxu0 %v3414_v43  ;;  %1622 = vmatpush1.msra.mxu1 %v3392_v25  ;;  %v3913_v25 = vld [vmem:[#allocation30_spill] sm:$0xff]  ;;  %v1544_v43 = vld [vmem:[%s3810_s15] sm:$0xff] }
 0x893   :  { %1558 = vmatpush1.msra.mxu0 %v3420_v24  ;;  %1623 = vmatprep.subr.mxu1 %v3398_v32  ;;  %v3915_v32 = vld [vmem:[#allocation32_spill] sm:$0xff]  ;;  %v3921_v24 = vld [vmem:[#allocation38_spill] sm:$0xff] }
 0x894   :  { %1559 = vmatprep.subr.mxu0 %v3426_v50  ;;  %1624 = vmatpush1.msra.mxu1 %v3404_v37  ;;  %v3917_v37 = vld [vmem:[#allocation34_spill] sm:$0xff]  ;;  %v3923_v50 = vld [vmem:[#allocation40_spill] sm:$0xff] }
 0x895   :  { %1560 = vmatpush1.msra.mxu0 %v3432_v16  ;;  %1625 = vmatprep.subr.mxu1 %v3410_v41  ;;  %v3919_v41 = vld [vmem:[#allocation36_spill] sm:$0xff]  ;;  %v3925_v16 = vld [vmem:[#allocation35_spill] sm:$0xff] }
 0x896   :  { %1561 = vmatprep.subr.mxu0 %v3438_v57  ;;  %1626 = vmatpush1.msra.mxu1 %v3416_v45  ;;  %v3920_v45 = vld [vmem:[#allocation29_spill] sm:$0xff] }
 0x897   :  { %1562 = vmatpush1.msra.mxu0 %v3444_v58  ;;  %1627 = vmatprep.subr.mxu1 %v3422_v46  ;;  %v3922_v46 = vld [vmem:[#allocation31_spill] sm:$0xff]  ;;  %v3926_v57 = vld [vmem:[#allocation37_spill] sm:$0xff] }
 0x898   :  { %1563 = vmatprep.subr.mxu0 %v3450_v62  ;;  %1628 = vmatpush1.msra.mxu1 %v3428_v26  ;;  %v3924_v26 = vld [vmem:[#allocation33_spill] sm:$0xff]  ;;  %v3927_v58 = vld [vmem:[#allocation39_spill] sm:$0xff] }
 0x899   :  { %1564 = vmatpush1.msra.mxu0 %v3899_v11  ;;  %1629 = vmatprep.subr.mxu1 %v3900_v12  ;;  %v3928_v62 = vld [vmem:[#allocation41_spill] sm:$0xff] }
 0x89a   :  { %1565 = vmatprep.subr.mxu0 %v3901_v61  ;;  %1630 = vmatpush1.msra.mxu1 %v3902_v13 }
 0x89b   :  { %1566 = vmatpush1.msra.mxu0 %v3903_v52  ;;  %1631 = vmatprep.subr.mxu1 %v3904_v14 }
 0x89c   :  { %1567 = vmatprep.subr.mxu0 %v3905_v15  ;;  %1632 = vmatpush1.msra.mxu1 %v3906_v17 }
 0x89d   :  { %1568 = vmatpush1.msra.mxu0 %v3907_v53  ;;  %1633 = vmatprep.subr.mxu1 %v3908_v20 }
 0x89e   :  { %1569 = vmatprep.subr.mxu0 %v3909_v21  ;;  %1634 = vmatpush1.msra.mxu1 %v3910_v22 }
 0x89f   :  { %1570 = vmatpush1.msra.mxu0 %v3911_v34  ;;  %1635 = vmatprep.subr.mxu1 %v3912_v23 }
 0x8a0   :  { %1571 = vmatprep.subr.mxu0 %v3913_v25  ;;  %1636 = vmatpush1.msra.mxu1 %v3914_v47 }
 0x8a1   :  { %1572 = vmatpush1.msra.mxu0 %v3915_v32  ;;  %1637 = vmatprep.subr.mxu1 %v3916_v33 }
 0x8a2   :  { %1573 = vmatprep.subr.mxu0 %v3917_v37  ;;  %1638 = vmatpush1.msra.mxu1 %v3918_v42 }
 0x8a3   :  { %1574 = vmatpush1.msra.mxu0 %v3919_v41  ;;  %1639 = vmatprep.subr.mxu1 %v3920_v45 }
 0x8a4   :  { %1575 = vmatprep.subr.mxu0 %v3921_v24  ;;  %1640 = vmatpush1.msra.mxu1 %v3922_v46 }
 0x8a5   :  { %1576 = vmatpush1.msra.mxu0 %v3923_v50  ;;  %1641 = vmatprep.subr.mxu1 %v3924_v26 }
 0x8a6   :  { %1610 = vmatmul.mubr.f32.vlgmr.msra.gmra.mxu0 %v1544_v43  ;;  %1642 = vmatpush1.msra.mxu1 %v3925_v16 }
 0x8a7   :  { %1643 = vmatprep.subr.mxu1 %v3926_v57  ;;  %1679 = vmatprep.mubr.f32.mxu1 %v3898_v10 }
 0x8a8   :  { %1644 = vmatpush1.msra.mxu1 %v3927_v58  ;;  %2712 = vmatprep.subr.mxu0 %v3898_v10 }
 0x8a9   :  { %1645 = vmatprep.subr.mxu1 %v3928_v62  ;;  %2716 = vmatprep.mubr.msk.f32.mxu0 %vm2899_vm13, %v3898_v10 }
 0x8aa   :  { %1646 = vmatpush1.msra.mxu1 %v3929_v39 }
 0x8ab   :  { %2719 = vmatprep.subr.mxu1 %v3898_v10  ;;  %1680 = vmatmul.mubr.f32.vlgmr.msra.gmra.mxu1 %v1544_v43 }
 0x8ac   :  { %2723 = vmatprep.mubr.msk.f32.mxu1 %vm2899_vm13, %v3898_v10 }
 0x946   :  { %v1458_v63 = vpop.f32.mrf.mxu0  ;;  %v1533_v1 = vpop.f32.mrf.mxu1 }
 0x947   :  { %v3675_v4 = vadd.f32 %v1533_v1, %v1383_v51 }
 0x948   :  { %v1459_v6 = vpop.f32.mrf.mxu0  ;;  %v1535_v5 = vpop.f32.mrf.mxu1 }
 0x949   :  { %v3665_v38 = vadd.f32 %v1535_v5, %v3662_v31  ;;  %v3693_v35 = vadd.f32 %v1459_v6, %v1379_v7 }
 0x94a   :  { %v1463_v3 = vpop.f32.mrf.mxu0 }
 0x94b   :  { %v1539_v54 = vpop.f32.mrf.mxu1 }
 0x94c   :  { %v3671_v27 = vadd.f32 %v1539_v54, %v1383_v51  ;;  %v1464_v19 = vpop.f32.mrf.mxu0 }
 0x94d   :  { %v3673_v44 = vadd.f32 %v1464_v19, %v1379_v7  ;;  %v1541_v18 = vpop.f32.mrf.mxu1 }
 0x94e   :  { %v3678_v60 = vadd.f32 %v1541_v18, %v3662_v31  ;;  %2720 = vmatpush3.msk.msra.mxu1 %vm370_vm1, %v3671_v27 }
 0x94f   :  { %2721 = vmatprep.subr.mxu1 %v3898_v10  ;;  %2713 = vmatpush3.xpose.msra.mxu0 %v3673_v44 }
 0x950   :  { %v3687_v8 = vadd.f32 %v3678_v60, %v3665_v38  ;;  %2722 = vmatpush3.msk.msra.mxu1 %vm370_vm1, %v3675_v4  ;;  %2714 = vmatprep.subr.mxu0 %v3898_v10 }
 0x951   :  { %2726 = vmatprep.subr.mxu1 %v3898_v10 }
 0x953   :  { %2715 = vmatpush3.xpose.msra.mxu0 %v3693_v35 }
 0x954   :  { %2733 = vmatprep.subr.mxu0 %v3898_v10 }
 0x966   :  { %v1611_v9 = vpop.f32.mrf.mxu0 }
 0x967   :  { %v3699_v30 = vadd.f32 %v1611_v9, %v1375_v2 }
 0x968   :  { %v1613_v48 = vpop.f32.mrf.mxu0 }
 0x969   :  { %2717 = vmatmul.mubr.msk.f32.vlgmr.msra.gmra.mxu0 %vm370_vm1, %v3699_v30 }
 0x96a   :  { %2734 = vmatpush3.msk.msra.mxu0 %vm3209_vm10, %v3671_v27  ;;  %2737 = vmatprep.mubr.msk.f32.mxu0 %vm2899_vm13, %v3898_v10 }
 0x96b   :  { %2735 = vmatprep.subr.mxu0 %v3898_v10  ;;  %v1681_v56 = vpop.f32.mrf.mxu1 }
 0x96c   :  { %2736 = vmatpush3.msk.msra.mxu0 %vm3209_vm10, %v3675_v4 }
 0x96d   :  { %2740 = vmatprep.subr.mxu0 %v3898_v10  ;;  %v1682_v23 = vpop.f32.mrf.mxu1 }
 0x96e   :  { %v1683_v25 = vadd.f32 %v1682_v23, %v3662_v31 }
 0xa29   :  { %v1752_v11 = vpop.f32.mrf.mxu0 }
 0xa2a   :  { %v1756_v12 = vmul.f32 0.17677669, %v1752_v11 }
 0xa2b   :  { %v2718_v61 = vpop.f32.mrf.mxu0 }
 0xa2c   :  { %v1757_v13 = vsel %vm72_vm0, %v1756_v12, -inf }
 0xa2d   :  { %1758 = vmax.xlane.f32.xlu1 %v1757_v13 }
 0xab6   :  { %v1759_v52 = vpop.xlane.xlu1 %1758 }
 0xab7   :  { %v1760_v14 = vsub.f32 %v1756_v12, %v1759_v52  ;;  %v2323_v12 = vrot.slane %v3687_v8, 4 }
 0xab9   :  { %v1761_v15 = vmul.f32 1.442695, %v1760_v14  ;;  %v2324_v61 = vadd.f32 %v2323_v12, %v3687_v8 }
 0xabb   :  { %2827 = vpow2.f32 %v1761_v15  ;;  %v2325_v52 = vrot.slane %v2324_v61, 2 }
 0xac8   :  { %v2828_v17 = vpop.eup %2827 }
 0xac9   :  { %v1763_v53 = vsel %vm72_vm0, %v2828_v17, 0.0 }
 0xaca   :  { %1764 = vadd.xlane.f32.xlu0 %v1763_v53  ;;  %v2326_v53 = vadd.f32 %v2325_v52, %v2324_v61 }
 0xb53   :  { %v1765_v20 = vpop.xlane.xlu0 %1764 }
 0xb54   :  { %2829 = vrcp.f32 %v1765_v20 }
 0xb61   :  { %v2830_v21 = vpop.eup %2829 }
 0xb62   :  { %v1767_v22 = vmul.f32 %v2830_v21, %v2828_v17 }
 0xb64   :  { %2724 = vmatmul.mubr.msk.f32.vlgmr.msra.gmra.mxu1 %vm72_vm0, %v1767_v22  ;;  %v2327_v22 = vrot.slane %v2326_v53, 1 }
 0xb65   :  { %2727 = vmatpush3.xpose.msra.mxu1 %v3673_v44  ;;  %2730 = vmatprep.mubr.msk.f32.mxu1 %vm2899_vm13, %v3898_v10 }
 0xb66   :  { %2728 = vmatprep.subr.mxu1 %v3898_v10 }
 0xb69   :  { %2729 = vmatpush3.xpose.msra.mxu1 %v3693_v35 }
 0xb6a   :  { %2747 = vmatprep.subr.mxu1 %v3898_v10 }
 0xb6c   :  { %2731 = vmatmul.mubr.msk.f32.vlgmr.msra.gmra.mxu1 %vm3209_vm10, %v3699_v30 }
 0xb6d   :  { %2748 = vmatpush3.msk.msra.mxu1 %vm3139_vm4, %v3671_v27  ;;  %2751 = vmatprep.mubr.msk.f32.mxu1 %vm2899_vm13, %v3898_v10 }
 0xb6e   :  { %2749 = vmatprep.subr.mxu1 %v3898_v10 }
 0xb6f   :  { %2750 = vmatpush3.msk.msra.mxu1 %vm3139_vm4, %v3675_v4 }
 0xb70   :  { %2754 = vmatprep.subr.mxu1 %v3898_v10 }
 0xc24   :  { %v1839_v47 = vpop.f32.mrf.mxu1 }
 0xc25   :  { %v1843_v32 = vadd.f32 %v1839_v47, %v1683_v25  ;;  %v2328_v25 = vadd.f32 %v2327_v22, %v2326_v53 }
 0xc26   :  { %v2725_v33 = vpop.f32.mrf.mxu1 }
 0xc2c   :  { %v1911_v37 = vpop.f32.mrf.mxu1 }
 0xc2d   :  { %v1915_v42 = vmul.f32 0.17677669, %v1911_v37 }
 0xc2e   :  { %v2732_v41 = vpop.f32.mrf.mxu1 }
 0xc2f   :  { %v1916_v43 = vsel %vm72_vm0, %v1915_v42, -inf }
 0xc30   :  { %1917 = vmax.xlane.f32.xlu1 %v1916_v43 }
 0xcb9   :  { %v1918_v45 = vpop.xlane.xlu1 %1917 }
 0xcba   :  { %v1919_v24 = vsub.f32 %v1915_v42, %v1918_v45 }
 0xcbc   :  { %v1920_v46 = vmul.f32 1.442695, %v1919_v24 }
 0xcbe   :  { %2831 = vpow2.f32 %v1920_v46 }
 0xccb   :  { %v2832_v50 = vpop.eup %2831 }
 0xccc   :  { %v1922_v26 = vsel %vm72_vm0, %v2832_v50, 0.0 }
 0xccd   :  { %1923 = vadd.xlane.f32.xlu0 %v1922_v26 }
 0xd56   :  { %v1924_v16 = vpop.xlane.xlu0 %1923 }
 0xd57   :  { %2833 = vrcp.f32 %v1924_v16 }
 0xd64   :  { %v2834_v57 = vpop.eup %2833 }
 0xd65   :  { %v1926_v58 = vmul.f32 %v2834_v57, %v2832_v50 }
 0xd67   :  { %2738 = vmatmul.mubr.msk.f32.vlgmr.msra.gmra.mxu0 %vm72_vm0, %v1926_v58 }
 0xd68   :  { %2741 = vmatpush3.xpose.msra.mxu0 %v3673_v44  ;;  %2744 = vmatprep.mubr.msk.f32.mxu0 %vm2899_vm13, %v3898_v10 }
 0xd69   :  { %2742 = vmatprep.subr.mxu0 %v3898_v10 }
 0xd6c   :  { %2743 = vmatpush3.xpose.msra.mxu0 %v3693_v35 }
 0xd6d   :  { %2761 = vmatprep.subr.mxu0 %v3898_v10 }
 0xd6f   :  { %2745 = vmatmul.mubr.msk.f32.vlgmr.msra.gmra.mxu0 %vm3139_vm4, %v3699_v30 }
 0xd70   :  { %2762 = vmatpush3.msk.msra.mxu0 %vm1035_vm5, %v3671_v27  ;;  %2765 = vmatprep.mubr.msk.f32.mxu0 %vm2899_vm13, %v3898_v10 }
 0xd71   :  { %2763 = vmatprep.subr.mxu0 %v3898_v10 }
 0xd72   :  { %2764 = vmatpush3.msk.msra.mxu0 %vm1035_vm5, %v3675_v4 }
 0xd73   :  { %2768 = vmatprep.subr.mxu0 %v3898_v10 }
 0xe27   :  { %v1998_v62 = vpop.f32.mrf.mxu0 }
 0xe28   :  { %v2002_v39 = vadd.f32 %v1998_v62, %v1843_v32 }
 0xe29   :  { %v2739_v59 = vpop.f32.mrf.mxu0 }
 0xe2f   :  { %v2070_v36 = vpop.f32.mrf.mxu0 }
 0xe30   :  { %v2074_v28 = vmul.f32 0.17677669, %v2070_v36 }
 0xe31   :  { %v2746_v31 = vpop.f32.mrf.mxu0 }
 0xe32   :  { %v2075_v63 = vsel %vm72_vm0, %v2074_v28, -inf }
 0xe33   :  { %2076 = vmax.xlane.f32.xlu1 %v2075_v63 }
 0xebc   :  { %v2077_v1 = vpop.xlane.xlu1 %2076 }
 0xebd   :  { %v2078_v6 = vsub.f32 %v2074_v28, %v2077_v1 }
 0xebf   :  { %v2079_v5 = vmul.f32 1.442695, %v2078_v6  ;;  %v2543_v6 = vld [vmem:[%s3807_s12] ss:$0 sm:$0xff] }
 0xec1   :  { %2835 = vpow2.f32 %v2079_v5 }
 0xece   :  { %v2836_v55 = vpop.eup %2835 }
 0xecf   :  { %v2081_v51 = vsel %vm72_vm0, %v2836_v55, 0.0 }
 0xed0   :  { %2082 = vadd.xlane.f32.xlu0 %v2081_v51  ;;  %v2544_v51 = vld [vmem:[%s3808_s13] ss:$0 sm:$0xff] }
 0xf59   :  { %v2083_v3 = vpop.xlane.xlu0 %2082 }
 0xf5a   :  { %2837 = vrcp.f32 %v2083_v3 }
 0xf67   :  { %v2838_v40 = vpop.eup %2837 }
 0xf68   :  { %v2085_v7 = vmul.f32 %v2838_v40, %v2836_v55 }
 0xf6a   :  { %2752 = vmatmul.mubr.msk.f32.vlgmr.msra.gmra.mxu1 %vm72_vm0, %v2085_v7 }
 0xf6b   :  { %2755 = vmatpush3.xpose.msra.mxu1 %v3673_v44  ;;  %2758 = vmatprep.mubr.msk.f32.mxu1 %vm2899_vm13, %v3898_v10 }
 0xf6c   :  { %2756 = vmatprep.subr.mxu1 %v3898_v10 }
 0xf6f   :  { %2757 = vmatpush3.xpose.msra.mxu1 %v3693_v35 }
 0xf72   :  { %2759 = vmatmul.mubr.msk.f32.vlgmr.msra.gmra.mxu1 %vm1035_vm5, %v3699_v30 }
0x102a   :  { %v2157_v54 = vpop.f32.mrf.mxu1 }
0x102b   :  { %v2161_v27 = vadd.f32 %v2157_v54, %v2002_v39 }
0x102c   :  { %v2753_v19 = vpop.f32.mrf.mxu1 }
0x1032   :  { %v2229_v18 = vpop.f32.mrf.mxu1 }
0x1033   :  { %v2233_v4 = vmul.f32 0.17677669, %v2229_v18 }
0x1034   :  { %v2760_v2 = vpop.f32.mrf.mxu1 }
0x1035   :  { %v2234_v9 = vsel %vm72_vm0, %v2233_v4, -inf }
0x1036   :  { %2235 = vmax.xlane.f32.xlu1 %v2234_v9 }
0x10bf   :  { %v2236_v44 = vpop.xlane.xlu1 %2235 }
0x10c0   :  { %v2237_v48 = vsub.f32 %v2233_v4, %v2236_v44 }
0x10c2   :  { %v2238_v0 = vmul.f32 1.442695, %v2237_v48 }
0x10c4   :  { %2839 = vpow2.f32 %v2238_v0 }
0x10d1   :  { %v2840_v56 = vpop.eup %2839 }
0x10d2   :  { %v2240_v35 = vsel %vm72_vm0, %v2840_v56, 0.0 }
0x10d3   :  { %2241 = vadd.xlane.f32.xlu0 %v2240_v35 }
0x115c   :  { %v2242_v11 = vpop.xlane.xlu0 %2241 }
0x115d   :  { %2841 = vrcp.f32 %v2242_v11 }
0x116a   :  { %v2842_v49 = vpop.eup %2841 }
0x116b   :  { %v2244_v30 = vmul.f32 %v2842_v49, %v2840_v56 }
0x116d   :  { %2766 = vmatmul.mubr.msk.f32.vlgmr.msra.gmra.mxu0 %vm72_vm0, %v2244_v30 }
0x116e   :  { %2770 = vmatprep.mubr.msk.f32.mxu0 %vm2899_vm13, %v3898_v10  ;;  %v2321_v10 = vld [vmem:[%s3809_s14] sm:$0x1] }
0x122d   :  { %v2316_v13 = vpop.f32.mrf.mxu0 }
0x122e   :  { %v2320_v14 = vadd.f32 %v2316_v13, %v2161_v27 }
0x122f   :  { %v2767_v15 = vpop.f32.mrf.mxu0 }
0x1230   :  { %v2329_v17 = vrot.slane %v2320_v14, 4 }
0x1232   :  { %v2330_v20 = vadd.f32 %v2329_v17, %v2320_v14 }
0x1234   :  { %v2331_v21 = vrot.slane %v2330_v20, 2 }
0x1236   :  { %v2332_v34 = vadd.f32 %v2331_v21, %v2330_v20 }
0x1238   :  { %v2333_v23 = vrot.slane %v2332_v34, 1 }
0x123a   :  { %v2334_v47 = vadd.f32 %v2333_v23, %v2332_v34 }
0x123c   :  { %v2335_v32 = vadd.f32 %v2334_v47, %v2328_v25 }
0x123e   :  { %v2336_v33 = vmul.f32 0.041666668, %v2335_v32 }
0x1240   :  { %v2337_v8 = vmul.f32 %v2336_v33, %v2321_v10 }
0x1242   :  { %v2341_v37 = vrot.slane %v2337_v8, %v3078_v29 }
0x1244   :  { %v2342_v42 = vsub.f32 %v3665_v38, %v2341_v37  ;;  %v2343_v41 = vsub.f32 %v3678_v60, %v2341_v37  ;;  %v2344_v43 = vsub.f32 %v2320_v14, %v2341_v37 }
0x1246   :  { %v2345_v45 = vmul.f32 %v2342_v42, %v2342_v42  ;;  %v2346_v24 = vmul.f32 %v2343_v41, %v2343_v41  ;;  %v2354_v46 = vmul.f32 %v2344_v43, %v2344_v43  ;;  %v2370_v5 = vmul.f32 %v2543_v6, %v2344_v43 }
0x1248   :  { %v2347_v50 = vadd.f32 %v2346_v24, %v2345_v45  ;;  %v2355_v26 = vrot.slane %v2354_v46, 4 }
0x124a   :  { %v2348_v16 = vrot.slane %v2347_v50, 4  ;;  %v2356_v57 = vadd.f32 %v2355_v26, %v2354_v46 }
0x124c   :  { %v2349_v58 = vadd.f32 %v2348_v16, %v2347_v50  ;;  %v2357_v62 = vrot.slane %v2356_v57, 2 }
0x124e   :  { %v2350_v39 = vrot.slane %v2349_v58, 2  ;;  %v2358_v59 = vadd.f32 %v2357_v62, %v2356_v57 }
0x1250   :  { %v2351_v36 = vadd.f32 %v2350_v39, %v2349_v58  ;;  %v2359_v28 = vrot.slane %v2358_v59, 1 }
0x1252   :  { %v2352_v31 = vrot.slane %v2351_v36, 1  ;;  %v2360_v63 = vadd.f32 %v2359_v28, %v2358_v59 }
0x1254   :  { %v2353_v29 = vadd.f32 %v2352_v31, %v2351_v36 }
0x1256   :  { %v2361_v38 = vadd.f32 %v2360_v63, %v2353_v29 }
0x1258   :  { %v2362_v1 = vmul.f32 0.041666668, %v2361_v38 }
0x125a   :  { %v2371_v60 = vadd.f32 1e-05, %v2362_v1 }
0x125c   :  { %2843 = vrsqrt.f32 %v2371_v60 }
0x1269   :  { %v2844_v55 = vpop.eup %2843 }
0x126a   :  { %v2373_v3 = vmul.f32 %v2844_v55, %v2370_v5 }
0x126c   :  { %v2381_v40 = vadd.f32 %v2544_v51, %v2373_v3 }
0x126e   :  { %v2382_v7 = vmax.f32 %v2381_v40, 0.0 }
0x1270   :  { %2769 = vmatpush3.xpose.msra.mxu0 %v2382_v7 }
0x1273   :  { %2771 = vmatmul.mubr.f32.vlgmr.msra.gmra.mxu0 %v2382_v7 }
0x1333   :  { %v2449_v54 = vpop.f32.mrf.mxu0 }
0x1334   :  { %v2465_v27 = vsel %vm2453_vm14, %v2449_v54, -inf  ;;  %v2454_v19 = vsel %vm2453_vm14, %v2449_v54, inf }
0x1335   :  { %2466 = vmax.xlane.f32.xlu0 %v2465_v27  ;;  %2455 = vmin.xlane.f32.xlu1 %v2454_v19  ;;  %v2772_v18 = vpop.f32.mrf.mxu0 }
0x13be   :  { %v2467_v4 = vpop.xlane.xlu0 %2466  ;;  %v2456_v2 = vpop.xlane.xlu1 %2455 }
0x13bf   :  { %v2468_v9 = vrot.slane %v2467_v4, 4  ;;  %v2457_v44 = vrot.slane %v2456_v2, 4 }
0x13c1   :  { %v2469_v48 = vmax.f32 %v2467_v4, %v2468_v9  ;;  %v2458_v0 = vmin.f32 %v2456_v2, %v2457_v44 }
0x13c3   :  { %v2470_v56 = vrot.slane %v2469_v48, 2  ;;  %v2459_v35 = vrot.slane %v2458_v0, 2 }
0x13c5   :  { %v2471_v11 = vmax.f32 %v2469_v48, %v2470_v56  ;;  %v2460_v49 = vmin.f32 %v2458_v0, %v2459_v35 }
0x13c7   :  { %v2461_v30 = vrot.slane %v2460_v49, 1  ;;  %v2472_v12 = vrot.slane %v2471_v11, 1 }
0x13c9   :  { %v2462_v61 = vmin.f32 %v2460_v49, %v2461_v30  ;;  %v2473_v13 = vmax.f32 %v2471_v11, %v2472_v12 }
0x13cb   :  { %2773 = vpush %v2462_v61 }
0x13cc   :  { %2775 = vpush %v2473_v13 }
0x13fc   :  { %s2774_s12 = spop %2773 }
0x13fd   :  { %v2464_v52 = vstv %s2774_s12  ;;  %s2776_s13 = spop %2775 }
0x13fe   :  { %v2475_v14 = vstv %s2776_s13  ;;  %v2479_v53 = vsub.f32 %v2449_v54, %v2464_v52 }
0x13ff   :  { %v2476_v15 = vsub.f32 %v2475_v14, %v2464_v52 }
0x1401   :  { %v2477_v17 = vadd.f32 1e-08, %v2476_v15 }
0x1403   :  { %2845 = vrcp.f32 %v2477_v17 }
0x1410   :  { %v2846_v20 = vpop.eup %2845 }
0x1411   :  { %v2480_v21 = vmul.f32 %v2846_v20, %v2479_v53 }
0x1413   :  { %2481 = vst.msk [vmem:[#allocation5] sm:$0xff] %vm2453_vm14, %v2480_v21 }
0x1414   :  { %2878 = shalt.err (!%p2875_p9)
}
0x1415   :  { %2491 = dma.vmem_to_hbm [thread:$0]  %s2489_s17, 128, %s3811_s16, [#allocation4]  }
0x1416   :  { %2889 = dma.done.wait [#allocation4], 128  }
0x1417   :  { %2890 = vsyncadd [#allocation4], 4294967168 }
0x1418   :  { %2495 = vsyncpa [#allocation3], 1 }
0x1419   :  { %2496 = vsyncpa [#allocation4], 1 }

</bundles_post_ra>
